<compile_context>
chip_gen: v7x
topology: tpu7x:2x2x1
jax: 0.10.0
libtpu: 0.0.40
codegen_flags: <defaults>
</compile_context>

<pallas_src>
import jax
import jax.numpy as jnp
import numpy as np
from jax.experimental import pallas as pl
from jax.experimental.pallas import tpu as pltpu


def _make_kernel(rows):
    ROWS = rows

    def kernel(ids_smem, ids_ref, emb_hbm, wenc_ref, benc_ref, wpool_ref,
               bpool_ref, gamma_ref, beta_ref, wcls_ref, bcls_ref,
               psel_ref, pmask_ref, out_ref, emb_vmem, sem):
        # ---- fused embedding gather: one row DMA per token, HBM -> VMEM -----
        # indices come from the scalar-prefetched ids in SMEM; all DMAs are
        # issued first, then drained (they overlap each other).
        base = pl.program_id(0) * ROWS

        def _row_copy(r):
            return pltpu.make_async_copy(
                emb_hbm.at[ids_smem[base + r]], emb_vmem.at[r], sem)

        def _start(r, carry):
            _row_copy(r).start()
            return carry

        def _wait(r, carry):
            _row_copy(r).wait()
            return carry

        jax.lax.fori_loop(0, ROWS, _start, 0)
        jax.lax.fori_loop(0, ROWS, _wait, 0)

        # ---- synthetic backbone encoder: tanh(Linear(H,H)) per token --------
        # bf16 x bf16 -> f32 accumulate on the MXU; elementwise math stays f32.
        emb_bf = emb_vmem[...].astype(jnp.bfloat16)                 # (ROWS, H)
        h = jnp.tanh(
            jnp.dot(emb_bf, wenc_ref[...],
                    preferred_element_type=jnp.float32)
            + benc_ref[...])                                        # (ROWS, H) f32

        # ---- masked mean pool over each row's S tokens, on the MXU ----------
        # pad mask (id == 0) folded into the precomputed selection matrix:
        # pm[b, t] = 1 iff token t belongs to local batch row b and is not pad.
        mask = (ids_ref[0] != 0).astype(jnp.float32)                # (1, ROWS)
        pm = psel_ref[...] * mask                                   # (TB, ROWS)
        denom = jnp.sum(pm, axis=-1, keepdims=True)                 # (TB, 1)
        pooled = jnp.dot(pm.astype(jnp.bfloat16), h.astype(jnp.bfloat16),
                         preferred_element_type=jnp.float32)        # (TB, H)
        pooled = pooled / jnp.maximum(denom, 1.0)

        # ---- synthetic BERT pooler -> "pooled output" (backbone output [1]) -
        cls = jnp.tanh(
            jnp.dot(pooled.astype(jnp.bfloat16), wpool_ref[...],
                    preferred_element_type=jnp.float32)
            + bpool_ref[...])                                       # (TB, H)

        # ---- PTModel head: LayerNorm(H), eps = 1e-5, elementwise affine -----
        mu = jnp.mean(cls, axis=-1, keepdims=True)
        xc = cls - mu
        var = jnp.mean(xc * xc, axis=-1, keepdims=True)
        xln = xc * jax.lax.rsqrt(var + jnp.float32(1e-5))
        xln = xln * gamma_ref[...] + beta_ref[...]
        # Dropout(p): identity in eval mode.

        # ---- ans / prop / entity classifiers fused into one lane-dense matmul
        logits = (jnp.dot(xln.astype(jnp.bfloat16), wcls_ref[...],
                          preferred_element_type=jnp.float32)
                  + bcls_ref[...])                                  # (TB, C_pad)
        out_ref[...] = jnp.where(pmask_ref[...] > 0.5,
                                 jax.nn.sigmoid(logits), logits)

    return kernel


def _pick_block_b(B, S, H):
    """Pick the batch tile.

    Targets ~1-2 MiB of gathered f32 embeddings per grid step (amortizes the
    ~0.35us per-step cost, fills the MXU), prefers an even number of steps so
    v7x's two TensorCores split the "parallel" batch axis evenly.  Sweep this
    per generation: v6e/v5e (128 MiB VMEM) tolerate much larger tiles than
    v7x (64 MiB).
    """
    target_rows = max(8 * S, (1 << 21) // (H * 4))
    cands = [b for b in range(8, B + 1, 8) if B % b == 0]
    if not cands:
        return B                                   # tiny batch: single block
    good = [b for b in cands if b * S <= target_rows] or [min(cands)]
    even = [b for b in good if (B // b) % 2 == 0]
    return max(even) if even else max(good)


def ptmodel_forward(input_ids, emb_table, wenc, benc, wpool, bpool,
                    gamma, beta, w_ans, b_ans, w_prop, b_prop, w_ent, b_ent,
                    *, block_b=None):
    B, S = input_ids.shape
    V, H = emb_table.shape
    ans_c, prop_c, ent_c = w_ans.shape[1], w_prop.shape[1], w_ent.shape[1]
    C = ans_c + prop_c + ent_c
    C_pad = ((C + 127) // 128) * 128               # lane-dense output block

    if block_b is None:
        block_b = _pick_block_b(B, S, H)
    assert B % block_b == 0, "batch must be a multiple of block_b"
    assert block_b % 8 == 0 or block_b == B, "block_b must be 8-aligned (or == B)"
    nb = B // block_b
    rows = block_b * S

    # --- embedding table stays in HBM; rows are f32 so the in-kernel gather
    #     DMAs are 32-bit aligned (cast to bf16 in-kernel for the MXU).
    emb_hbm = emb_table.astype(jnp.float32)

    # --- ids: scalar-prefetched flat copy (SMEM, drives the gather) and a
    #     lane-major (nb, 1, rows) copy (VMEM, drives the pad mask).
    ids_smem = input_ids.reshape(B * S).astype(jnp.int32)
    ids_vec = input_ids.reshape(nb, 1, rows).astype(jnp.int32)

    # --- MXU operands in bf16, biases / LN params in f32 ----------------------
    wenc_bf = wenc.astype(jnp.bfloat16)
    wpool_bf = wpool.astype(jnp.bfloat16)
    wcls = jnp.concatenate([w_ans, w_prop, w_ent], axis=1)
    wcls = jnp.pad(wcls, ((0, 0), (0, C_pad - C))).astype(jnp.bfloat16)
    bcls = jnp.concatenate([b_ans, b_prop, b_ent]).reshape(1, C)
    bcls = jnp.pad(bcls, ((0, 0), (0, C_pad - C))).astype(jnp.float32)

    # --- grid-invariant helpers hoisted out of the kernel ---------------------
    r_idx = np.arange(block_b)[:, None]
    c_idx = np.arange(rows)[None, :]
    psel = jnp.asarray(((c_idx // S) == r_idx).astype(np.float32))   # (TB, rows)
    pmask_np = np.zeros((1, C_pad), np.float32)
    pmask_np[0, ans_c:ans_c + prop_c] = 1.0                          # sigmoid cols
    pmask = jnp.asarray(pmask_np)

    kernel = _make_kernel(rows)

    def run(single_buffer_consts):
        const = lambda i, ids: (0, 0)

        def wspec(shape):
            # Grid-invariant operands: single-buffer them to save VMEM
            # (matters at real BERT sizes, esp. on v7x's 64 MiB budget).
            if single_buffer_consts:
                return pl.BlockSpec(shape, const, pipeline_mode=pl.Buffered(1))
            return pl.BlockSpec(shape, const)

        # Explicit VMEM budget (review, v7x item): gathered rows + f32/bf16
        # activation copies + weights (+ pipeline double-buffers where used).
        nbuf = 1 if single_buffer_consts else 2
        est = (rows * H * 4                                  # gathered emb scratch
               + rows * H * (4 + 2 + 2)                      # h f32 + bf16 copies
               + nbuf * (2 * H * H + H * C_pad) * 2          # wenc/wpool/wcls bf16
               + nbuf * (6 * H + 2 * C_pad) * 4              # biases / LN / pmask
               + nbuf * block_b * rows * 4                   # psel
               + 2 * rows * 4                                # ids block
               + 2 * block_b * C_pad * 4)                    # output tile
        vmem_limit = min(48 << 20, max(32 << 20, 2 * est))   # <= 48 MiB: v7x-safe

        grid_spec = pltpu.PrefetchScalarGridSpec(
            num_scalar_prefetch=1,
            grid=(nb,),
            in_specs=[
                pl.BlockSpec((1, 1, rows), lambda i, ids: (i, 0, 0)),  # ids (lane-major)
                pl.BlockSpec(memory_space=pl.ANY),                     # emb table (HBM)
                wspec((H, H)),                                         # encoder W (bf16)
                wspec((1, H)),                                         # encoder b
                wspec((H, H)),                                         # pooler W (bf16)
                wspec((1, H)),                                         # pooler b
                wspec((1, H)),                                         # LayerNorm gamma
                wspec((1, H)),                                         # LayerNorm beta
                wspec((H, C_pad)),                                     # fused cls W (bf16)
                wspec((1, C_pad)),                                     # fused cls b
                wspec((block_b, rows)),                                # pooling selection
                wspec((1, C_pad)),                                     # prop-column mask
            ],
            out_specs=pl.BlockSpec((block_b, C_pad), lambda i, ids: (i, 0)),
            scratch_shapes=[
                pltpu.VMEM((rows, H), jnp.float32),          # gathered embeddings
                pltpu.SemaphoreType.DMA(()),                 # gather DMA semaphore
            ],
        )

        return pl.pallas_call(
            kernel,
            out_shape=jax.ShapeDtypeStruct((B, C_pad), jnp.float32),
            grid_spec=grid_spec,
            compiler_params=pltpu.CompilerParams(
                dimension_semantics=("parallel",),           # megacore on v7x
                vmem_limit_bytes=int(vmem_limit)),
        )(ids_smem, ids_vec, emb_hbm,
          wenc_bf, benc.reshape(1, H),
          wpool_bf, bpool.reshape(1, H),
          gamma.reshape(1, H), beta.reshape(1, H),
          wcls, bcls, psel, pmask)

    try:
        out = jax.block_until_ready(run(True))
    except Exception:
        # pipeline_mode=pl.Buffered(1) unavailable -> default double buffering.
        out = run(False)

    ans_logits = out[:, :ans_c]
    prop_logits = out[:, ans_c:ans_c + prop_c]
    entity_logits = out[:, ans_c + prop_c:C]
    return ans_logits, prop_logits, entity_logits


def reference_forward(input_ids, emb_table, wenc, benc, wpool, bpool,
                      gamma, beta, w_ans, b_ans, w_prop, b_prop, w_ent, b_ent):
    # Plain-JAX reference with the same operand precision policy as the kernel
    # (bf16 MXU operands, f32 accumulation, f32 elementwise math).
    emb = jnp.take(emb_table, input_ids, axis=0).astype(jnp.bfloat16)  # (B,S,H)
    h = jnp.tanh(jnp.einsum('bsh,hk->bsk', emb, wenc.astype(jnp.bfloat16),
                            preferred_element_type=jnp.float32) + benc)
    mask = (input_ids != 0).astype(jnp.float32)                        # (B,S)
    pooled = jnp.einsum('bs,bsh->bh', mask, h) / jnp.maximum(
        jnp.sum(mask, axis=-1, keepdims=True), 1.0)
    cls = jnp.tanh(jnp.dot(pooled.astype(jnp.bfloat16),
                           wpool.astype(jnp.bfloat16),
                           preferred_element_type=jnp.float32) + bpool)
    mu = jnp.mean(cls, axis=-1, keepdims=True)
    xc = cls - mu
    var = jnp.mean(xc * xc, axis=-1, keepdims=True)
    xln = xc * jax.lax.rsqrt(var + jnp.float32(1e-5)) * gamma + beta
    xb = xln.astype(jnp.bfloat16)
    ans = jnp.dot(xb, w_ans.astype(jnp.bfloat16),
                  preferred_element_type=jnp.float32) + b_ans
    prop = jax.nn.sigmoid(jnp.dot(xb, w_prop.astype(jnp.bfloat16),
                                  preferred_element_type=jnp.float32) + b_prop)
    ent = jnp.dot(xb, w_ent.astype(jnp.bfloat16),
                  preferred_element_type=jnp.float32) + b_ent
    return ans, prop, ent


if __name__ == "__main__":
    B, S, H, V = 16, 8, 128, 100
    ANS, PROP, ENT = 3, 4, 5

    key = jax.random.PRNGKey(0)
    (k_ids, k_emb, k_enc, k_pool, k_g, k_b,
     k_ans, k_prop, k_ent) = jax.random.split(key, 9)

    # input_ids with per-row trailing padding (id 0 == pad)
    ids = jax.random.randint(k_ids, (B, S), 1, V, dtype=jnp.int32)
    lengths = 4 + (jnp.arange(B) % (S - 3))           # lengths in [4, S]
    input_ids = jnp.where(jnp.arange(S)[None, :] < lengths[:, None], ids, 0)

    # synthetic backbone parameters
    emb_table = (jax.random.normal(k_emb, (V, H)) * 0.5).astype(jnp.float32)
    wenc = (jax.random.normal(k_enc, (H, H)) * 0.1).astype(jnp.bfloat16)
    benc = jnp.zeros((H,), jnp.float32)
    wpool = (jax.random.normal(k_pool, (H, H)) * 0.1).astype(jnp.float32)
    bpool = jnp.zeros((H,), jnp.float32)

    # PTModel head parameters
    gamma = (1.0 + 0.1 * jax.random.normal(k_g, (H,))).astype(jnp.float32)
    beta = (0.1 * jax.random.normal(k_b, (H,))).astype(jnp.float32)
    w_ans = (jax.random.normal(k_ans, (H, ANS)) * 0.1).astype(jnp.float32)
    b_ans = jnp.zeros((ANS,), jnp.float32)
    w_prop = (jax.random.normal(k_prop, (H, PROP)) * 0.1).astype(jnp.float32)
    b_prop = jnp.zeros((PROP,), jnp.float32)
    w_ent = (jax.random.normal(k_ent, (H, ENT)) * 0.1).astype(jnp.float32)
    b_ent = jnp.zeros((ENT,), jnp.float32)

    args = (input_ids, emb_table, wenc, benc, wpool, bpool,
            gamma, beta, w_ans, b_ans, w_prop, b_prop, w_ent, b_ent)

    outs = ptmodel_forward(*args)          # block_b picked automatically (8 -> nb=2)
    outs = jax.block_until_ready(outs)

    refs = reference_forward(*args)
    # tolerance covers bf16 MXU accumulation-order / rounding differences
    for got, ref in zip(outs, refs):
        np.testing.assert_allclose(np.asarray(got), np.asarray(ref),
                                   rtol=2e-2, atol=2e-2)
    print("KERNEL_OK")
</pallas_src>

<mosaic_0001>
module attributes {stable_mosaic.version = 11 : i64} {
  func.func @kernel(%arg0: i32, %arg1: memref<128xi32, #tpu.memory_space<smem>>, %arg2: memref<1x1x64xi32, #tpu.memory_space<vmem>>, %arg3: memref<100x128xf32, #tpu.memory_space<any>>, %arg4: memref<128x128xbf16, #tpu.memory_space<vmem>>, %arg5: memref<1x128xf32, #tpu.memory_space<vmem>>, %arg6: memref<128x128xbf16, #tpu.memory_space<vmem>>, %arg7: memref<1x128xf32, #tpu.memory_space<vmem>>, %arg8: memref<1x128xf32, #tpu.memory_space<vmem>>, %arg9: memref<1x128xf32, #tpu.memory_space<vmem>>, %arg10: memref<128x128xbf16, #tpu.memory_space<vmem>>, %arg11: memref<1x128xf32, #tpu.memory_space<vmem>>, %arg12: memref<8x64xf32, #tpu.memory_space<vmem>>, %arg13: memref<1x128xf32, #tpu.memory_space<vmem>>, %arg14: memref<8x128xf32, #tpu.memory_space<vmem>>, %arg15: memref<64x128xf32, #tpu.memory_space<vmem>>, %arg16: memref<!tpu.dma_semaphore, #tpu.memory_space<semaphore_mem>>) attributes {dimension_semantics = [#tpu.dimension_semantics<parallel>], iteration_bounds = array<i64: 2>, scalar_prefetch = 1 : i64, scratch_operands = 2 : i64, tpu.core_type = #tpu.core_type<tc>, window_params = [{transform_indices = @transform_0, window_bounds = array<i64: 1, 1, 64>}, {}, {pipeline_mode = #tpu.pipeline_mode<synchronous>, transform_indices = @transform_2, window_bounds = array<i64: 128, 128>}, {pipeline_mode = #tpu.pipeline_mode<synchronous>, transform_indices = @transform_3, window_bounds = array<i64: 1, 128>}, {pipeline_mode = #tpu.pipeline_mode<synchronous>, transform_indices = @transform_4, window_bounds = array<i64: 128, 128>}, {pipeline_mode = #tpu.pipeline_mode<synchronous>, transform_indices = @transform_5, window_bounds = array<i64: 1, 128>}, {pipeline_mode = #tpu.pipeline_mode<synchronous>, transform_indices = @transform_6, window_bounds = array<i64: 1, 128>}, {pipeline_mode = #tpu.pipeline_mode<synchronous>, transform_indices = @transform_7, window_bounds = array<i64: 1, 128>}, {pipeline_mode = #tpu.pipeline_mode<synchronous>, transform_indices = @transform_8, window_bounds = array<i64: 128, 128>}, {pipeline_mode = #tpu.pipeline_mode<synchronous>, transform_indices = @transform_9, window_bounds = array<i64: 1, 128>}, {pipeline_mode = #tpu.pipeline_mode<synchronous>, transform_indices = @transform_10, window_bounds = array<i64: 8, 64>}, {pipeline_mode = #tpu.pipeline_mode<synchronous>, transform_indices = @transform_11, window_bounds = array<i64: 1, 128>}, {transform_indices = @transform_12, window_bounds = array<i64: 8, 128>}]} {
    %c64_i32 = arith.constant 64 : i32
    %0 = arith.muli %arg0, %c64_i32 : i32
    %c0_i32 = arith.constant 0 : i32
    %c64_i32_0 = arith.constant 64 : i32
    %1 = arith.addi %c0_i32, %c64_i32_0 : i32
    %c1_i32 = arith.constant 1 : i32
    scf.for %arg17 = %c0_i32 to %1 step %c1_i32  : i32 {
      %76 = arith.addi %0, %arg17 : i32
      %77 = arith.index_cast %76 : i32 to index
      %78 = memref.load %arg1[%77] : memref<128xi32, #tpu.memory_space<smem>>
      %c0_i32_45 = arith.constant 0 : i32
      %79 = tpu.memref_slice %arg3[%78, %c0_i32_45] : memref<100x128xf32, #tpu.memory_space<any>> -> memref<1x128xf32, #tpu.memory_space<any>>
      %80 = tpu.memref_squeeze %79 : memref<1x128xf32, #tpu.memory_space<any>> -> memref<128xf32, #tpu.memory_space<any>>
      %c0_i32_46 = arith.constant 0 : i32
      %81 = tpu.memref_slice %arg15[%arg17, %c0_i32_46] : memref<64x128xf32, #tpu.memory_space<vmem>> -> memref<1x128xf32, #tpu.memory_space<vmem>>
      %82 = tpu.memref_squeeze %81 : memref<1x128xf32, #tpu.memory_space<vmem>> -> memref<128xf32, #tpu.memory_space<vmem>>
      tpu.enqueue_dma source(%80 : memref<128xf32, #tpu.memory_space<any>>) target(%82 : memref<128xf32, #tpu.memory_space<vmem>>) target_semaphore(%arg16 : memref<!tpu.dma_semaphore, #tpu.memory_space<semaphore_mem>>)
    }
    %c64_i32_1 = arith.constant 64 : i32
    %c0_i32_2 = arith.constant 0 : i32
    %c64_i32_3 = arith.constant 64 : i32
    %2 = arith.addi %c0_i32_2, %c64_i32_3 : i32
    %c1_i32_4 = arith.constant 1 : i32
    scf.for %arg17 = %c0_i32_2 to %2 step %c1_i32_4  : i32 {
      %76 = arith.addi %0, %arg17 : i32
      %77 = arith.index_cast %76 : i32 to index
      %78 = memref.load %arg1[%77] : memref<128xi32, #tpu.memory_space<smem>>
      %c0_i32_45 = arith.constant 0 : i32
      %79 = tpu.memref_slice %arg3[%78, %c0_i32_45] : memref<100x128xf32, #tpu.memory_space<any>> -> memref<1x128xf32, #tpu.memory_space<any>>
      %80 = tpu.memref_squeeze %79 : memref<1x128xf32, #tpu.memory_space<any>> -> memref<128xf32, #tpu.memory_space<any>>
      %c0_i32_46 = arith.constant 0 : i32
      %81 = tpu.memref_slice %arg15[%arg17, %c0_i32_46] : memref<64x128xf32, #tpu.memory_space<vmem>> -> memref<1x128xf32, #tpu.memory_space<vmem>>
      %82 = tpu.memref_squeeze %81 : memref<1x128xf32, #tpu.memory_space<vmem>> -> memref<128xf32, #tpu.memory_space<vmem>>
      tpu.wait_dma2 semaphore(%arg16 : memref<!tpu.dma_semaphore, #tpu.memory_space<semaphore_mem>>) src(%80 : memref<128xf32, #tpu.memory_space<any>>) dst(%82 : memref<128xf32, #tpu.memory_space<vmem>>)
    }
    %c64_i32_5 = arith.constant 64 : i32
    %c0 = arith.constant 0 : index
    %c0_6 = arith.constant 0 : index
    %3 = vector.load %arg15[%c0, %c0_6] : memref<64x128xf32, #tpu.memory_space<vmem>>, vector<64x128xf32>
    %4 = arith.truncf %3 : vector<64x128xf32> to vector<64x128xbf16>
    %c0_7 = arith.constant 0 : index
    %c0_8 = arith.constant 0 : index
    %5 = vector.load %arg4[%c0_7, %c0_8] : memref<128x128xbf16, #tpu.memory_space<vmem>>, vector<128x128xbf16>
    %cst = arith.constant dense<0.000000e+00> : vector<64x128xf32>
    %6 = tpu.matmul %4, %5, %cst {dimension_numbers = #tpu.dot_dimension_numbers<[1], [0], [0], [1], [0, 0, 1, 1], [], []>} : vector<64x128xbf16>, vector<128x128xbf16>, vector<64x128xf32> -> vector<64x128xf32>
    %c0_9 = arith.constant 0 : index
    %c0_10 = arith.constant 0 : index
    %7 = vector.load %arg5[%c0_9, %c0_10] : memref<1x128xf32, #tpu.memory_space<vmem>>, vector<1x128xf32>
    %8 = vector.broadcast %7 : vector<1x128xf32> to vector<64x128xf32>
    %9 = arith.addf %6, %8 : vector<64x128xf32>
    %10 = math.tanh %9 : vector<64x128xf32>
    %c0_11 = arith.constant 0 : index
    %c0_12 = arith.constant 0 : index
    %c0_13 = arith.constant 0 : index
    %11 = vector.load %arg2[%c0_11, %c0_12, %c0_13] : memref<1x1x64xi32, #tpu.memory_space<vmem>>, vector<1x1x64xi32>
    %12 = vector.shape_cast %11 : vector<1x1x64xi32> to vector<1x64xi32>
    %c0_i32_14 = arith.constant 0 : i32
    %13 = vector.broadcast %c0_i32_14 : i32 to vector<1x64xi32>
    %14 = arith.cmpi ne, %12, %13 : vector<1x64xi32>
    %15 = arith.extui %14 : vector<1x64xi1> to vector<1x64xi32>
    %16 = arith.sitofp %15 : vector<1x64xi32> to vector<1x64xf32>
    %c0_15 = arith.constant 0 : index
    %c0_16 = arith.constant 0 : index
    %17 = vector.load %arg12[%c0_15, %c0_16] : memref<8x64xf32, #tpu.memory_space<vmem>>, vector<8x64xf32>
    %18 = vector.broadcast %16 : vector<1x64xf32> to vector<8x64xf32>
    %19 = arith.mulf %17, %18 : vector<8x64xf32>
    %cst_17 = arith.constant dense<0.000000e+00> : vector<8xf32>
    %20 = vector.multi_reduction <add>, %19, %cst_17 [1] : vector<8x64xf32> to vector<8xf32>
    %21 = vector.shape_cast %20 : vector<8xf32> to vector<8x1xf32>
    %22 = arith.truncf %19 : vector<8x64xf32> to vector<8x64xbf16>
    %23 = arith.truncf %10 : vector<64x128xf32> to vector<64x128xbf16>
    %cst_18 = arith.constant dense<0.000000e+00> : vector<8x128xf32>
    %24 = tpu.matmul %22, %23, %cst_18 {dimension_numbers = #tpu.dot_dimension_numbers<[1], [0], [0], [1], [0, 0, 1, 1], [], []>} : vector<8x64xbf16>, vector<64x128xbf16>, vector<8x128xf32> -> vector<8x128xf32>
    %cst_19 = arith.constant 1.000000e+00 : f32
    %25 = vector.broadcast %cst_19 : f32 to vector<8x1xf32>
    %26 = arith.maximumf %21, %25 : vector<8x1xf32>
    %27 = vector.broadcast %26 : vector<8x1xf32> to vector<8x128xf32>
    %28 = arith.divf %24, %27 : vector<8x128xf32>
    %29 = arith.truncf %28 : vector<8x128xf32> to vector<8x128xbf16>
    %c0_20 = arith.constant 0 : index
    %c0_21 = arith.constant 0 : index
    %30 = vector.load %arg6[%c0_20, %c0_21] : memref<128x128xbf16, #tpu.memory_space<vmem>>, vector<128x128xbf16>
    %cst_22 = arith.constant dense<0.000000e+00> : vector<8x128xf32>
    %31 = tpu.matmul %29, %30, %cst_22 {dimension_numbers = #tpu.dot_dimension_numbers<[1], [0], [0], [1], [0, 0, 1, 1], [], []>} : vector<8x128xbf16>, vector<128x128xbf16>, vector<8x128xf32> -> vector<8x128xf32>
    %c0_23 = arith.constant 0 : index
    %c0_24 = arith.constant 0 : index
    %32 = vector.load %arg7[%c0_23, %c0_24] : memref<1x128xf32, #tpu.memory_space<vmem>>, vector<1x128xf32>
    %33 = vector.broadcast %32 : vector<1x128xf32> to vector<8x128xf32>
    %34 = arith.addf %31, %33 : vector<8x128xf32>
    %35 = math.tanh %34 : vector<8x128xf32>
    %cst_25 = arith.constant dense<0.000000e+00> : vector<8xf32>
    %36 = vector.multi_reduction <add>, %35, %cst_25 [1] : vector<8x128xf32> to vector<8xf32>
    %37 = vector.shape_cast %36 : vector<8xf32> to vector<8x1xf32>
    %cst_26 = arith.constant 1.280000e+02 : f32
    %38 = vector.broadcast %cst_26 : f32 to vector<8x1xf32>
    %39 = arith.divf %37, %38 : vector<8x1xf32>
    %40 = vector.broadcast %39 : vector<8x1xf32> to vector<8x128xf32>
    %41 = arith.subf %35, %40 : vector<8x128xf32>
    %42 = arith.mulf %41, %41 : vector<8x128xf32>
    %cst_27 = arith.constant dense<0.000000e+00> : vector<8xf32>
    %43 = vector.multi_reduction <add>, %42, %cst_27 [1] : vector<8x128xf32> to vector<8xf32>
    %44 = vector.shape_cast %43 : vector<8xf32> to vector<8x1xf32>
    %cst_28 = arith.constant 1.280000e+02 : f32
    %45 = vector.broadcast %cst_28 : f32 to vector<8x1xf32>
    %46 = arith.divf %44, %45 : vector<8x1xf32>
    %cst_29 = arith.constant 9.99999974E-6 : f32
    %47 = vector.broadcast %cst_29 : f32 to vector<8x1xf32>
    %48 = arith.addf %46, %47 : vector<8x1xf32>
    %49 = math.rsqrt %48 : vector<8x1xf32>
    %50 = vector.broadcast %49 : vector<8x1xf32> to vector<8x128xf32>
    %51 = arith.mulf %41, %50 : vector<8x128xf32>
    %c0_30 = arith.constant 0 : index
    %c0_31 = arith.constant 0 : index
    %52 = vector.load %arg8[%c0_30, %c0_31] : memref<1x128xf32, #tpu.memory_space<vmem>>, vector<1x128xf32>
    %53 = vector.broadcast %52 : vector<1x128xf32> to vector<8x128xf32>
    %54 = arith.mulf %51, %53 : vector<8x128xf32>
    %c0_32 = arith.constant 0 : index
    %c0_33 = arith.constant 0 : index
    %55 = vector.load %arg9[%c0_32, %c0_33] : memref<1x128xf32, #tpu.memory_space<vmem>>, vector<1x128xf32>
    %56 = vector.broadcast %55 : vector<1x128xf32> to vector<8x128xf32>
    %57 = arith.addf %54, %56 : vector<8x128xf32>
    %58 = arith.truncf %57 : vector<8x128xf32> to vector<8x128xbf16>
    %c0_34 = arith.constant 0 : index
    %c0_35 = arith.constant 0 : index
    %59 = vector.load %arg10[%c0_34, %c0_35] : memref<128x128xbf16, #tpu.memory_space<vmem>>, vector<128x128xbf16>
    %cst_36 = arith.constant dense<0.000000e+00> : vector<8x128xf32>
    %60 = tpu.matmul %58, %59, %cst_36 {dimension_numbers = #tpu.dot_dimension_numbers<[1], [0], [0], [1], [0, 0, 1, 1], [], []>} : vector<8x128xbf16>, vector<128x128xbf16>, vector<8x128xf32> -> vector<8x128xf32>
    %c0_37 = arith.constant 0 : index
    %c0_38 = arith.constant 0 : index
    %61 = vector.load %arg11[%c0_37, %c0_38] : memref<1x128xf32, #tpu.memory_space<vmem>>, vector<1x128xf32>
    %62 = vector.broadcast %61 : vector<1x128xf32> to vector<8x128xf32>
    %63 = arith.addf %60, %62 : vector<8x128xf32>
    %c0_39 = arith.constant 0 : index
    %c0_40 = arith.constant 0 : index
    %64 = vector.load %arg13[%c0_39, %c0_40] : memref<1x128xf32, #tpu.memory_space<vmem>>, vector<1x128xf32>
    %cst_41 = arith.constant 5.000000e-01 : f32
    %65 = vector.broadcast %cst_41 : f32 to vector<1x128xf32>
    %66 = arith.cmpf ogt, %64, %65 : vector<1x128xf32>
    %67 = arith.negf %63 : vector<8x128xf32>
    %68 = math.exp %67 : vector<8x128xf32>
    %cst_42 = arith.constant 1.000000e+00 : f32
    %69 = vector.broadcast %cst_42 : f32 to vector<8x128xf32>
    %70 = arith.addf %69, %68 : vector<8x128xf32>
    %71 = arith.divf %69, %70 : vector<8x128xf32>
    %72 = vector.shape_cast %66 : vector<1x128xi1> to vector<1x128xi1>
    %73 = vector.broadcast %72 : vector<1x128xi1> to vector<8x128xi1>
    %74 = arith.select %73, %71, %63 : vector<8x128xi1>, vector<8x128xf32>
    %c0_43 = arith.constant 0 : index
    %c0_44 = arith.constant 0 : index
    %75 = vector.load %arg14[%c0_43, %c0_44] : memref<8x128xf32, #tpu.memory_space<vmem>>, vector<8x128xf32>
    tpu.vector_store %arg14[%c0_43, %c0_44], %74 {strides = array<i32>} : memref<8x128xf32, #tpu.memory_space<vmem>>, vector<8x128xf32>,
    return
  }
  func.func @transform_0(%arg0: i32, %arg1: memref<128xi32, #tpu.memory_space<smem>>) -> (i32, i32, i32) {
    %c0_i32 = arith.constant 0 : i32
    %c0_i32_0 = arith.constant 0 : i32
    %c0_i32_1 = arith.constant 0 : i32
    return %arg0, %c0_i32, %c0_i32_0 : i32, i32, i32
  }
  func.func @transform_2(%arg0: i32, %arg1: memref<128xi32, #tpu.memory_space<smem>>) -> (i32, i32) {
    %c0_i32 = arith.constant 0 : i32
    %c0_i32_0 = arith.constant 0 : i32
    %c0_i32_1 = arith.constant 0 : i32
    return %c0_i32, %c0_i32_0 : i32, i32
  }
  func.func @transform_3(%arg0: i32, %arg1: memref<128xi32, #tpu.memory_space<smem>>) -> (i32, i32) {
    %c0_i32 = arith.constant 0 : i32
    %c0_i32_0 = arith.constant 0 : i32
    %c0_i32_1 = arith.constant 0 : i32
    return %c0_i32, %c0_i32_0 : i32, i32
  }
  func.func @transform_4(%arg0: i32, %arg1: memref<128xi32, #tpu.memory_space<smem>>) -> (i32, i32) {
    %c0_i32 = arith.constant 0 : i32
    %c0_i32_0 = arith.constant 0 : i32
    %c0_i32_1 = arith.constant 0 : i32
    return %c0_i32, %c0_i32_0 : i32, i32
  }
  func.func @transform_5(%arg0: i32, %arg1: memref<128xi32, #tpu.memory_space<smem>>) -> (i32, i32) {
    %c0_i32 = arith.constant 0 : i32
    %c0_i32_0 = arith.constant 0 : i32
    %c0_i32_1 = arith.constant 0 : i32
    return %c0_i32, %c0_i32_0 : i32, i32
  }
  func.func @transform_6(%arg0: i32, %arg1: memref<128xi32, #tpu.memory_space<smem>>) -> (i32, i32) {
    %c0_i32 = arith.constant 0 : i32
    %c0_i32_0 = arith.constant 0 : i32
    %c0_i32_1 = arith.constant 0 : i32
    return %c0_i32, %c0_i32_0 : i32, i32
  }
  func.func @transform_7(%arg0: i32, %arg1: memref<128xi32, #tpu.memory_space<smem>>) -> (i32, i32) {
    %c0_i32 = arith.constant 0 : i32
    %c0_i32_0 = arith.constant 0 : i32
    %c0_i32_1 = arith.constant 0 : i32
    return %c0_i32, %c0_i32_0 : i32, i32
  }
  func.func @transform_8(%arg0: i32, %arg1: memref<128xi32, #tpu.memory_space<smem>>) -> (i32, i32) {
    %c0_i32 = arith.constant 0 : i32
    %c0_i32_0 = arith.constant 0 : i32
    %c0_i32_1 = arith.constant 0 : i32
    return %c0_i32, %c0_i32_0 : i32, i32
  }
  func.func @transform_9(%arg0: i32, %arg1: memref<128xi32, #tpu.memory_space<smem>>) -> (i32, i32) {
    %c0_i32 = arith.constant 0 : i32
    %c0_i32_0 = arith.constant 0 : i32
    %c0_i32_1 = arith.constant 0 : i32
    return %c0_i32, %c0_i32_0 : i32, i32
  }
  func.func @transform_10(%arg0: i32, %arg1: memref<128xi32, #tpu.memory_space<smem>>) -> (i32, i32) {
    %c0_i32 = arith.constant 0 : i32
    %c0_i32_0 = arith.constant 0 : i32
    %c0_i32_1 = arith.constant 0 : i32
    return %c0_i32, %c0_i32_0 : i32, i32
  }
  func.func @transform_11(%arg0: i32, %arg1: memref<128xi32, #tpu.memory_space<smem>>) -> (i32, i32) {
    %c0_i32 = arith.constant 0 : i32
    %c0_i32_0 = arith.constant 0 : i32
    %c0_i32_1 = arith.constant 0 : i32
    return %c0_i32, %c0_i32_0 : i32, i32
  }
  func.func @transform_12(%arg0: i32, %arg1: memref<128xi32, #tpu.memory_space<smem>>) -> (i32, i32) {
    %c0_i32 = arith.constant 0 : i32
    %c0_i32_0 = arith.constant 0 : i32
    return %arg0, %c0_i32 : i32, i32
  }
}

module attributes {stable_mosaic.version = 11 : i64} {
  func.func @kernel(%arg0: i32, %arg1: memref<128xi32, #tpu.memory_space<smem>>, %arg2: memref<1x1x64xi32, #tpu.memory_space<vmem>>, %arg3: memref<100x128xf32, #tpu.memory_space<any>>, %arg4: memref<128x128xbf16, #tpu.memory_space<vmem>>, %arg5: memref<1x128xf32, #tpu.memory_space<vmem>>, %arg6: memref<128x128xbf16, #tpu.memory_space<vmem>>, %arg7: memref<1x128xf32, #tpu.memory_space<vmem>>, %arg8: memref<1x128xf32, #tpu.memory_space<vmem>>, %arg9: memref<1x128xf32, #tpu.memory_space<vmem>>, %arg10: memref<128x128xbf16, #tpu.memory_space<vmem>>, %arg11: memref<1x128xf32, #tpu.memory_space<vmem>>, %arg12: memref<8x64xf32, #tpu.memory_space<vmem>>, %arg13: memref<1x128xf32, #tpu.memory_space<vmem>>, %arg14: memref<8x128xf32, #tpu.memory_space<vmem>>, %arg15: memref<64x128xf32, #tpu.memory_space<vmem>>, %arg16: memref<!tpu.dma_semaphore, #tpu.memory_space<semaphore_mem>>) attributes {dimension_semantics = [#tpu.dimension_semantics<parallel>], iteration_bounds = array<i64: 2>, scalar_prefetch = 1 : i64, scratch_operands = 2 : i64, tpu.core_type = #tpu.core_type<tc>, window_params = [{transform_indices = @transform_0, window_bounds = array<i64: 1, 1, 64>}, {}, {pipeline_mode = #tpu.pipeline_mode<synchronous>, transform_indices = @transform_2, window_bounds = array<i64: 128, 128>}, {pipeline_mode = #tpu.pipeline_mode<synchronous>, transform_indices = @transform_3, window_bounds = array<i64: 1, 128>}, {pipeline_mode = #tpu.pipeline_mode<synchronous>, transform_indices = @transform_4, window_bounds = array<i64: 128, 128>}, {pipeline_mode = #tpu.pipeline_mode<synchronous>, transform_indices = @transform_5, window_bounds = array<i64: 1, 128>}, {pipeline_mode = #tpu.pipeline_mode<synchronous>, transform_indices = @transform_6, window_bounds = array<i64: 1, 128>}, {pipeline_mode = #tpu.pipeline_mode<synchronous>, transform_indices = @transform_7, window_bounds = array<i64: 1, 128>}, {pipeline_mode = #tpu.pipeline_mode<synchronous>, transform_indices = @transform_8, window_bounds = array<i64: 128, 128>}, {pipeline_mode = #tpu.pipeline_mode<synchronous>, transform_indices = @transform_9, window_bounds = array<i64: 1, 128>}, {pipeline_mode = #tpu.pipeline_mode<synchronous>, transform_indices = @transform_10, window_bounds = array<i64: 8, 64>}, {pipeline_mode = #tpu.pipeline_mode<synchronous>, transform_indices = @transform_11, window_bounds = array<i64: 1, 128>}, {transform_indices = @transform_12, window_bounds = array<i64: 8, 128>}]} {
    %c64_i32 = arith.constant 64 : i32
    %0 = arith.muli %arg0, %c64_i32 : i32
    %c0_i32 = arith.constant 0 : i32
    %c64_i32_0 = arith.constant 64 : i32
    %1 = arith.addi %c0_i32, %c64_i32_0 : i32
    %c1_i32 = arith.constant 1 : i32
    scf.for %arg17 = %c0_i32 to %1 step %c1_i32  : i32 {
      %76 = arith.addi %0, %arg17 : i32
      %77 = arith.index_cast %76 : i32 to index
      %78 = memref.load %arg1[%77] : memref<128xi32, #tpu.memory_space<smem>>
      %c0_i32_45 = arith.constant 0 : i32
      %79 = tpu.memref_slice %arg3[%78, %c0_i32_45] : memref<100x128xf32, #tpu.memory_space<any>> -> memref<1x128xf32, #tpu.memory_space<any>>
      %80 = tpu.memref_squeeze %79 : memref<1x128xf32, #tpu.memory_space<any>> -> memref<128xf32, #tpu.memory_space<any>>
      %c0_i32_46 = arith.constant 0 : i32
      %81 = tpu.memref_slice %arg15[%arg17, %c0_i32_46] : memref<64x128xf32, #tpu.memory_space<vmem>> -> memref<1x128xf32, #tpu.memory_space<vmem>>
      %82 = tpu.memref_squeeze %81 : memref<1x128xf32, #tpu.memory_space<vmem>> -> memref<128xf32, #tpu.memory_space<vmem>>
      tpu.enqueue_dma source(%80 : memref<128xf32, #tpu.memory_space<any>>) target(%82 : memref<128xf32, #tpu.memory_space<vmem>>) target_semaphore(%arg16 : memref<!tpu.dma_semaphore, #tpu.memory_space<semaphore_mem>>)
    }
    %c64_i32_1 = arith.constant 64 : i32
    %c0_i32_2 = arith.constant 0 : i32
    %c64_i32_3 = arith.constant 64 : i32
    %2 = arith.addi %c0_i32_2, %c64_i32_3 : i32
    %c1_i32_4 = arith.constant 1 : i32
    scf.for %arg17 = %c0_i32_2 to %2 step %c1_i32_4  : i32 {
      %76 = arith.addi %0, %arg17 : i32
      %77 = arith.index_cast %76 : i32 to index
      %78 = memref.load %arg1[%77] : memref<128xi32, #tpu.memory_space<smem>>
      %c0_i32_45 = arith.constant 0 : i32
      %79 = tpu.memref_slice %arg3[%78, %c0_i32_45] : memref<100x128xf32, #tpu.memory_space<any>> -> memref<1x128xf32, #tpu.memory_space<any>>
      %80 = tpu.memref_squeeze %79 : memref<1x128xf32, #tpu.memory_space<any>> -> memref<128xf32, #tpu.memory_space<any>>
      %c0_i32_46 = arith.constant 0 : i32
      %81 = tpu.memref_slice %arg15[%arg17, %c0_i32_46] : memref<64x128xf32, #tpu.memory_space<vmem>> -> memref<1x128xf32, #tpu.memory_space<vmem>>
      %82 = tpu.memref_squeeze %81 : memref<1x128xf32, #tpu.memory_space<vmem>> -> memref<128xf32, #tpu.memory_space<vmem>>
      tpu.wait_dma2 semaphore(%arg16 : memref<!tpu.dma_semaphore, #tpu.memory_space<semaphore_mem>>) src(%80 : memref<128xf32, #tpu.memory_space<any>>) dst(%82 : memref<128xf32, #tpu.memory_space<vmem>>)
    }
    %c64_i32_5 = arith.constant 64 : i32
    %c0 = arith.constant 0 : index
    %c0_6 = arith.constant 0 : index
    %3 = vector.load %arg15[%c0, %c0_6] : memref<64x128xf32, #tpu.memory_space<vmem>>, vector<64x128xf32>
    %4 = arith.truncf %3 : vector<64x128xf32> to vector<64x128xbf16>
    %c0_7 = arith.constant 0 : index
    %c0_8 = arith.constant 0 : index
    %5 = vector.load %arg4[%c0_7, %c0_8] : memref<128x128xbf16, #tpu.memory_space<vmem>>, vector<128x128xbf16>
    %cst = arith.constant dense<0.000000e+00> : vector<64x128xf32>
    %6 = tpu.matmul %4, %5, %cst {dimension_numbers = #tpu.dot_dimension_numbers<[1], [0], [0], [1], [0, 0, 1, 1], [], []>} : vector<64x128xbf16>, vector<128x128xbf16>, vector<64x128xf32> -> vector<64x128xf32>
    %c0_9 = arith.constant 0 : index
    %c0_10 = arith.constant 0 : index
    %7 = vector.load %arg5[%c0_9, %c0_10] : memref<1x128xf32, #tpu.memory_space<vmem>>, vector<1x128xf32>
    %8 = vector.broadcast %7 : vector<1x128xf32> to vector<64x128xf32>
    %9 = arith.addf %6, %8 : vector<64x128xf32>
    %10 = math.tanh %9 : vector<64x128xf32>
    %c0_11 = arith.constant 0 : index
    %c0_12 = arith.constant 0 : index
    %c0_13 = arith.constant 0 : index
    %11 = vector.load %arg2[%c0_11, %c0_12, %c0_13] : memref<1x1x64xi32, #tpu.memory_space<vmem>>, vector<1x1x64xi32>
    %12 = vector.shape_cast %11 : vector<1x1x64xi32> to vector<1x64xi32>
    %c0_i32_14 = arith.constant 0 : i32
    %13 = vector.broadcast %c0_i32_14 : i32 to vector<1x64xi32>
    %14 = arith.cmpi ne, %12, %13 : vector<1x64xi32>
    %15 = arith.extui %14 : vector<1x64xi1> to vector<1x64xi32>
    %16 = arith.sitofp %15 : vector<1x64xi32> to vector<1x64xf32>
    %c0_15 = arith.constant 0 : index
    %c0_16 = arith.constant 0 : index
    %17 = vector.load %arg12[%c0_15, %c0_16] : memref<8x64xf32, #tpu.memory_space<vmem>>, vector<8x64xf32>
    %18 = vector.broadcast %16 : vector<1x64xf32> to vector<8x64xf32>
    %19 = arith.mulf %17, %18 : vector<8x64xf32>
    %cst_17 = arith.constant dense<0.000000e+00> : vector<8xf32>
    %20 = vector.multi_reduction <add>, %19, %cst_17 [1] : vector<8x64xf32> to vector<8xf32>
    %21 = vector.shape_cast %20 : vector<8xf32> to vector<8x1xf32>
    %22 = arith.truncf %19 : vector<8x64xf32> to vector<8x64xbf16>
    %23 = arith.truncf %10 : vector<64x128xf32> to vector<64x128xbf16>
    %cst_18 = arith.constant dense<0.000000e+00> : vector<8x128xf32>
    %24 = tpu.matmul %22, %23, %cst_18 {dimension_numbers = #tpu.dot_dimension_numbers<[1], [0], [0], [1], [0, 0, 1, 1], [], []>} : vector<8x64xbf16>, vector<64x128xbf16>, vector<8x128xf32> -> vector<8x128xf32>
    %cst_19 = arith.constant 1.000000e+00 : f32
    %25 = vector.broadcast %cst_19 : f32 to vector<8x1xf32>
    %26 = arith.maximumf %21, %25 : vector<8x1xf32>
    %27 = vector.broadcast %26 : vector<8x1xf32> to vector<8x128xf32>
    %28 = arith.divf %24, %27 : vector<8x128xf32>
    %29 = arith.truncf %28 : vector<8x128xf32> to vector<8x128xbf16>
    %c0_20 = arith.constant 0 : index
    %c0_21 = arith.constant 0 : index
    %30 = vector.load %arg6[%c0_20, %c0_21] : memref<128x128xbf16, #tpu.memory_space<vmem>>, vector<128x128xbf16>
    %cst_22 = arith.constant dense<0.000000e+00> : vector<8x128xf32>
    %31 = tpu.matmul %29, %30, %cst_22 {dimension_numbers = #tpu.dot_dimension_numbers<[1], [0], [0], [1], [0, 0, 1, 1], [], []>} : vector<8x128xbf16>, vector<128x128xbf16>, vector<8x128xf32> -> vector<8x128xf32>
    %c0_23 = arith.constant 0 : index
    %c0_24 = arith.constant 0 : index
    %32 = vector.load %arg7[%c0_23, %c0_24] : memref<1x128xf32, #tpu.memory_space<vmem>>, vector<1x128xf32>
    %33 = vector.broadcast %32 : vector<1x128xf32> to vector<8x128xf32>
    %34 = arith.addf %31, %33 : vector<8x128xf32>
    %35 = math.tanh %34 : vector<8x128xf32>
    %cst_25 = arith.constant dense<0.000000e+00> : vector<8xf32>
    %36 = vector.multi_reduction <add>, %35, %cst_25 [1] : vector<8x128xf32> to vector<8xf32>
    %37 = vector.shape_cast %36 : vector<8xf32> to vector<8x1xf32>
    %cst_26 = arith.constant 1.280000e+02 : f32
    %38 = vector.broadcast %cst_26 : f32 to vector<8x1xf32>
    %39 = arith.divf %37, %38 : vector<8x1xf32>
    %40 = vector.broadcast %39 : vector<8x1xf32> to vector<8x128xf32>
    %41 = arith.subf %35, %40 : vector<8x128xf32>
    %42 = arith.mulf %41, %41 : vector<8x128xf32>
    %cst_27 = arith.constant dense<0.000000e+00> : vector<8xf32>
    %43 = vector.multi_reduction <add>, %42, %cst_27 [1] : vector<8x128xf32> to vector<8xf32>
    %44 = vector.shape_cast %43 : vector<8xf32> to vector<8x1xf32>
    %cst_28 = arith.constant 1.280000e+02 : f32
    %45 = vector.broadcast %cst_28 : f32 to vector<8x1xf32>
    %46 = arith.divf %44, %45 : vector<8x1xf32>
    %cst_29 = arith.constant 9.99999974E-6 : f32
    %47 = vector.broadcast %cst_29 : f32 to vector<8x1xf32>
    %48 = arith.addf %46, %47 : vector<8x1xf32>
    %49 = math.rsqrt %48 : vector<8x1xf32>
    %50 = vector.broadcast %49 : vector<8x1xf32> to vector<8x128xf32>
    %51 = arith.mulf %41, %50 : vector<8x128xf32>
    %c0_30 = arith.constant 0 : index
    %c0_31 = arith.constant 0 : index
    %52 = vector.load %arg8[%c0_30, %c0_31] : memref<1x128xf32, #tpu.memory_space<vmem>>, vector<1x128xf32>
    %53 = vector.broadcast %52 : vector<1x128xf32> to vector<8x128xf32>
    %54 = arith.mulf %51, %53 : vector<8x128xf32>
    %c0_32 = arith.constant 0 : index
    %c0_33 = arith.constant 0 : index
    %55 = vector.load %arg9[%c0_32, %c0_33] : memref<1x128xf32, #tpu.memory_space<vmem>>, vector<1x128xf32>
    %56 = vector.broadcast %55 : vector<1x128xf32> to vector<8x128xf32>
    %57 = arith.addf %54, %56 : vector<8x128xf32>
    %58 = arith.truncf %57 : vector<8x128xf32> to vector<8x128xbf16>
    %c0_34 = arith.constant 0 : index
    %c0_35 = arith.constant 0 : index
    %59 = vector.load %arg10[%c0_34, %c0_35] : memref<128x128xbf16, #tpu.memory_space<vmem>>, vector<128x128xbf16>
    %cst_36 = arith.constant dense<0.000000e+00> : vector<8x128xf32>
    %60 = tpu.matmul %58, %59, %cst_36 {dimension_numbers = #tpu.dot_dimension_numbers<[1], [0], [0], [1], [0, 0, 1, 1], [], []>} : vector<8x128xbf16>, vector<128x128xbf16>, vector<8x128xf32> -> vector<8x128xf32>
    %c0_37 = arith.constant 0 : index
    %c0_38 = arith.constant 0 : index
    %61 = vector.load %arg11[%c0_37, %c0_38] : memref<1x128xf32, #tpu.memory_space<vmem>>, vector<1x128xf32>
    %62 = vector.broadcast %61 : vector<1x128xf32> to vector<8x128xf32>
    %63 = arith.addf %60, %62 : vector<8x128xf32>
    %c0_39 = arith.constant 0 : index
    %c0_40 = arith.constant 0 : index
    %64 = vector.load %arg13[%c0_39, %c0_40] : memref<1x128xf32, #tpu.memory_space<vmem>>, vector<1x128xf32>
    %cst_41 = arith.constant 5.000000e-01 : f32
    %65 = vector.broadcast %cst_41 : f32 to vector<1x128xf32>
    %66 = arith.cmpf ogt, %64, %65 : vector<1x128xf32>
    %67 = arith.negf %63 : vector<8x128xf32>
    %68 = math.exp %67 : vector<8x128xf32>
    %cst_42 = arith.constant 1.000000e+00 : f32
    %69 = vector.broadcast %cst_42 : f32 to vector<8x128xf32>
    %70 = arith.addf %69, %68 : vector<8x128xf32>
    %71 = arith.divf %69, %70 : vector<8x128xf32>
    %72 = vector.shape_cast %66 : vector<1x128xi1> to vector<1x128xi1>
    %73 = vector.broadcast %72 : vector<1x128xi1> to vector<8x128xi1>
    %74 = arith.select %73, %71, %63 : vector<8x128xi1>, vector<8x128xf32>
    %c0_43 = arith.constant 0 : index
    %c0_44 = arith.constant 0 : index
    %75 = vector.load %arg14[%c0_43, %c0_44] : memref<8x128xf32, #tpu.memory_space<vmem>>, vector<8x128xf32>
    tpu.vector_store %arg14[%c0_43, %c0_44], %74 {strides = array<i32>} : memref<8x128xf32, #tpu.memory_space<vmem>>, vector<8x128xf32>,
    return
  }
  func.func @transform_0(%arg0: i32, %arg1: memref<128xi32, #tpu.memory_space<smem>>) -> (i32, i32, i32) {
    %c0_i32 = arith.constant 0 : i32
    %c0_i32_0 = arith.constant 0 : i32
    %c0_i32_1 = arith.constant 0 : i32
    return %arg0, %c0_i32, %c0_i32_0 : i32, i32, i32
  }
  func.func @transform_2(%arg0: i32, %arg1: memref<128xi32, #tpu.memory_space<smem>>) -> (i32, i32) {
    %c0_i32 = arith.constant 0 : i32
    %c0_i32_0 = arith.constant 0 : i32
    %c0_i32_1 = arith.constant 0 : i32
    return %c0_i32, %c0_i32_0 : i32, i32
  }
  func.func @transform_3(%arg0: i32, %arg1: memref<128xi32, #tpu.memory_space<smem>>) -> (i32, i32) {
    %c0_i32 = arith.constant 0 : i32
    %c0_i32_0 = arith.constant 0 : i32
    %c0_i32_1 = arith.constant 0 : i32
    return %c0_i32, %c0_i32_0 : i32, i32
  }
  func.func @transform_4(%arg0: i32, %arg1: memref<128xi32, #tpu.memory_space<smem>>) -> (i32, i32) {
    %c0_i32 = arith.constant 0 : i32
    %c0_i32_0 = arith.constant 0 : i32
    %c0_i32_1 = arith.constant 0 : i32
    return %c0_i32, %c0_i32_0 : i32, i32
  }
  func.func @transform_5(%arg0: i32, %arg1: memref<128xi32, #tpu.memory_space<smem>>) -> (i32, i32) {
    %c0_i32 = arith.constant 0 : i32
    %c0_i32_0 = arith.constant 0 : i32
    %c0_i32_1 = arith.constant 0 : i32
    return %c0_i32, %c0_i32_0 : i32, i32
  }
  func.func @transform_6(%arg0: i32, %arg1: memref<128xi32, #tpu.memory_space<smem>>) -> (i32, i32) {
    %c0_i32 = arith.constant 0 : i32
    %c0_i32_0 = arith.constant 0 : i32
    %c0_i32_1 = arith.constant 0 : i32
    return %c0_i32, %c0_i32_0 : i32, i32
  }
  func.func @transform_7(%arg0: i32, %arg1: memref<128xi32, #tpu.memory_space<smem>>) -> (i32, i32) {
    %c0_i32 = arith.constant 0 : i32
    %c0_i32_0 = arith.constant 0 : i32
    %c0_i32_1 = arith.constant 0 : i32
    return %c0_i32, %c0_i32_0 : i32, i32
  }
  func.func @transform_8(%arg0: i32, %arg1: memref<128xi32, #tpu.memory_space<smem>>) -> (i32, i32) {
    %c0_i32 = arith.constant 0 : i32
    %c0_i32_0 = arith.constant 0 : i32
    %c0_i32_1 = arith.constant 0 : i32
    return %c0_i32, %c0_i32_0 : i32, i32
  }
  func.func @transform_9(%arg0: i32, %arg1: memref<128xi32, #tpu.memory_space<smem>>) -> (i32, i32) {
    %c0_i32 = arith.constant 0 : i32
    %c0_i32_0 = arith.constant 0 : i32
    %c0_i32_1 = arith.constant 0 : i32
    return %c0_i32, %c0_i32_0 : i32, i32
  }
  func.func @transform_10(%arg0: i32, %arg1: memref<128xi32, #tpu.memory_space<smem>>) -> (i32, i32) {
    %c0_i32 = arith.constant 0 : i32
    %c0_i32_0 = arith.constant 0 : i32
    %c0_i32_1 = arith.constant 0 : i32
    return %c0_i32, %c0_i32_0 : i32, i32
  }
  func.func @transform_11(%arg0: i32, %arg1: memref<128xi32, #tpu.memory_space<smem>>) -> (i32, i32) {
    %c0_i32 = arith.constant 0 : i32
    %c0_i32_0 = arith.constant 0 : i32
    %c0_i32_1 = arith.constant 0 : i32
    return %c0_i32, %c0_i32_0 : i32, i32
  }
  func.func @transform_12(%arg0: i32, %arg1: memref<128xi32, #tpu.memory_space<smem>>) -> (i32, i32) {
    %c0_i32 = arith.constant 0 : i32
    %c0_i32_0 = arith.constant 0 : i32
    return %arg0, %c0_i32 : i32, i32
  }
}

</mosaic_0001>

<bundles_post_ra>
// kernel: tpu_custom_call.1
= control target key start
LH: loop header
LB: loop body
LE: loop exit
PB: predicated region body
PF: predicated region fallthrough
CT: control target
= control target key end

     0   :  { %s1988_s0 = inlined_call_operand.hbm [shape: s32[128], index: 0, kind: input, shape index: {}]   ;;  %s1989_s1 = inlined_call_operand.vmem [shape: s32[2,1,64], index: 1, kind: input, shape index: {}]   ;;  %s1990_s2 = inlined_call_operand.hbm [shape: f32[100,128], index: 2, kind: input, shape index: {}]   ;;  %s1991_s3 = inlined_call_operand.hbm [shape: bf16[128,128], index: 3, kind: input, shape index: {}]   ;;  %s1992_s4 = inlined_call_operand.vmem [shape: f32[1,128], index: 4, kind: input, shape index: {}]   ;;  %s1993_s5 = inlined_call_operand.hbm [shape: bf16[128,128], index: 5, kind: input, shape index: {}]   ;;  %s1994_s6 = inlined_call_operand.vmem [shape: f32[1,128], index: 6, kind: input, shape index: {}]   ;;  %s1995_s7 = inlined_call_operand.vmem [shape: f32[1,128], index: 7, kind: input, shape index: {}]   ;;  %s1996_s8 = inlined_call_operand.vmem [shape: f32[1,128], index: 8, kind: input, shape index: {}]   ;;  %s1997_s9 = inlined_call_operand.hbm [shape: bf16[128,128], index: 9, kind: input, shape index: {}]   ;;  %s1998_s10 = inlined_call_operand.vmem [shape: f32[1,128], index: 10, kind: input, shape index: {}]   ;;  %s1999_s11 = inlined_call_operand.vmem [shape: f32[8,64], index: 11, kind: input, shape index: {}]   ;;  %s2000_s12 = inlined_call_operand.vmem [shape: f32[1,128], index: 12, kind: input, shape index: {}]   ;;  %s2001_s13 = inlined_call_operand.hbm [shape: f32[16,128], index: 13, kind: output, shape index: {}]  }
   0x1   :  { %2015 = sst [smem:[#allocation29_spill]] %s1991_s3  ;;  %s1378_s27 = scalar_lea.hbm %s1988_s0, 16 }
   0x2   :  { %2016 = sst [smem:[#allocation30_spill]] %s2001_s13  ;;  %p1379_p0 = scmp.ne.s32.totalorder %s1988_s0, %s1378_s27 }
   0x3   :  { %p1382_p1 = scmp.lt.u32.totalorder %s1378_s27, %s1988_s0 }
   0x5   :  { %p1384_p2 = pnand %p1382_p1, %p1379_p0 }
   0x7   :  { %1387 = shalt.err (!%p1384_p2)  }
   0x8   :  { %s1588_s15 = smov [#allocation5]  }
   0x9   :  { %19 = dma.hbm_to_smem %s1988_s0, 16, %s1588_s15, [#allocation4] }
   0xa   :  { %1548 = dma.done.wait [#allocation4], 16 }
   0xb   :  { %1549 = vsyncadd [#allocation4], 4294967280 }
   0xc   :  { %21 = sfence }
   0xd   :  { %22 = vsyncpa [#allocation7], 0 }
   0xe   :  { %23 = vsyncpa [#allocation10], 0 }
   0xf   :  { %24 = vsyncpa [#allocation8], 0 }
  0x10   :  { %26 = vsyncpa [#allocation8 + $0x1], 0  ;;  %s1681_s18 = smov 0   ;;  %s1683_s19 = smov 0  }
  0x11   :  { %s1685_s20 = smov 0   ;;  %s1687_s21 = smov 0  }
  0x12 LB: > { %2017 = sst [smem:[#allocation22_spill]] %s1566_s18  ;;  %s1702_s0 = sadd.s32 4294967295, %s1578_s21   ;;  %s1578_s21 = sphi %s1687_s21, %s2046_s21   ;;  %s1574_s20 = sphi %s1685_s20, %s2051_s20   ;;  %s1570_s19 = sphi %s1683_s19, %s2050_s19   ;;  %s1566_s18 = sphi %s1681_s18, %s2049_s18  }
  0x13   : > { %2018 = sst [smem:[#allocation23_spill]] %s1574_s20  ;;  %s1075_s22 = sadd.s32 4294967294, %s1578_s21  }
  0x14   : > { %2019 = sst [smem:[#allocation24_spill]] %s1578_s21  ;;  %s1706_s23 = sadd.s32 1, %s1578_s21  }
  0x15   : > { %2020 = sst [smem:[#allocation25_spill]] %s1706_s23  ;;  %s275_s24 = sadd.s32 1, %s1574_s20 }
  0x16   : > { %s272_s25 = ssub.s32 %s1578_s21, %s1706_s23  ;;  %p285_p3 = scmp.ne.s32.totalorder %s1574_s20, %s1570_s19 }
  0x17   : > { %p273_p4 = scmp.eq.s32.totalorder %s272_s25, 0  ;;  %p286_p5 = scmp.eq.s32.totalorder %s1702_s0, 1 }
  0x18   : > { %p291_p6 = scmp.ne.s32.totalorder %s1570_s19, %s1566_s18  ;;  %p292_p7 = scmp.eq.s32.totalorder %s1075_s22, 1 }
  0x19   : > { %s1717_s26 = scalar_select %p273_p4, %s1574_s20, %s275_s24  }
  0x1a   : > { %p1719_p8 = por %p286_p5, %p285_p3  ;;  %p1723_p9 = por %p292_p7, %p291_p6 }
  0x1b   : > { %2021 = sst [smem:[#allocation26_spill]] %s1717_s26  ;;  %p1076_p10 = scmp.ge.s32.totalorder %s1578_s21, 1 }
  0x1c   : > { %s2022_s27 = scalar_select %p1719_p8, 1, 0 }
  0x1d   : > { %s2024_s28 = scalar_select %p1723_p9, 1, 0 }
  0x1e   : > { %2023 = sst [smem:[#allocation27_spill]] %s2022_s27  ;;  %p299_p11 = scmp.lt.s32.totalorder %s1578_s21, 3 }
  0x1f   : > { %2025 = sst [smem:[#allocation28_spill]] %s2024_s28  ;;  %p2006_p12 = scmp.eq.s32.totalorder %s1702_s0, 0 }
  0x20   : > { %p1730_p13 = pnand %p1076_p10, %p299_p11  ;;  %s1589_s30 = smov [#allocation9]  }
  0x21   : > { %s327_s14 = sshll.u32 %s1589_s30, 4  ;;  %s1590_s16 = smov [#allocation6]   ;;  %s1736_s14 = int_to_ptr.vmem [resolvable:$true] %s327_s14 }
  0x22   : > { %s2026_s29 = scalar_select %p1730_p13, 1, 0 }
  0x23   : > { %p1250_p0 = pneg %p1730_p13  ;;  %s311_s17 = sshll.u32 %s1590_s16, 4  ;;  %s1744_s17 = int_to_ptr.vmem [resolvable:$true] %s311_s17 }
  0x24   : > { %s1591_s22 = smov [#allocation11]   ;;  %s1388_s20 = scalar_lea.hbm %s1993_s5, 1024 }
  0x25   : > { %p1740_p1 = pnand %p2006_p12, %p1250_p0  ;;  %s1746_s24 = sshll.u32 %s1591_s22, 4  ;;  %s350_s24 = int_to_ptr.vmem [resolvable:$true] %s1746_s24 }
  0x26   : > { %p1389_p2 = scmp.ne.s32.totalorder %s1993_s5, %s1388_s20  ;;  %p1395_p6 = scmp.lt.u32.totalorder %s1388_s20, %s1993_s5 }
  0x27   : > { %p1756_p3 = pneg %p1740_p1 }
  0x29   : > { %p1391_p4 = pnand %p1756_p3, %p1389_p2 }
  0x2b   : > { %p1392_p5 = pneg %p1391_p4 }
  0x2d   : > { %p1397_p7 = pnand %p1395_p6, %p1392_p5 }
  0x2f   : > { %1400 = shalt.err (!%p1397_p7)
}
  0x30   : > { %s1401_s23 = scalar_lea.vmem %s1736_s14, 1024  ;;  %p1409_p12 = scmp.lt.s32.totalorder %s1736_s14, %s1736_s14 }
  0x31   : > { %p1402_p10 = scmp.ne.s32.totalorder %s1736_s14, %s1401_s23  ;;  %p1410_p9 = scmp.lt.s32.totalorder %s1401_s23, %s1401_s23 }
  0x33   : > { %p1404_p11 = pnand %p1402_p10, %p1756_p3  ;;  %p1411_p2 = por %p1410_p9, %p1409_p12 }
  0x35   : > { %p1405_p0 = pneg %p1404_p11 }
  0x37   : > { %p1412_p4 = pnand %p1411_p2, %p1405_p0 }
  0x39   : > { %1415 = shalt.err (!%p1412_p4)
}
  0x3a   : > { %s1592_s26 = smov 64   ;;  %s1593_s20 = smov 4  }
  0x3b   : > { %1256 = dma.hbm_to_vmem [thread:$0]  (!%p1740_p1), %s1993_s5, 1024, %s1736_s14, [#allocation10], %s1592_s26, %s1592_s26, %s1593_s20  }
  0x3c   : > { %s2029_s3 = sld [smem:[#allocation29_spill]] }
  0x42   : > { %s1416_s23 = scalar_lea.hbm %s2029_s3, 1024 }
  0x43   : > { %p1417_p9 = scmp.ne.s32.totalorder %s2029_s3, %s1416_s23  ;;  %p1423_p6 = scmp.lt.u32.totalorder %s1416_s23, %s2029_s3 }
  0x45   : > { %p1419_p12 = pnand %p1417_p9, %p1756_p3 }
  0x47   : > { %p1420_p5 = pneg %p1419_p12 }
  0x49   : > { %p1425_p7 = pnand %p1423_p6, %p1420_p5 }
  0x4b   : > { %1428 = shalt.err (!%p1425_p7)
}
  0x4c   : > { %s1429_s14 = scalar_lea.vmem %s1744_s17, 1024  ;;  %p1437_p2 = scmp.lt.s32.totalorder %s1744_s17, %s1744_s17 }
  0x4d   : > { %p1430_p10 = scmp.ne.s32.totalorder %s1744_s17, %s1429_s14  ;;  %p1438_p4 = scmp.lt.s32.totalorder %s1429_s14, %s1429_s14 }
  0x4f   : > { %p1432_p11 = pnand %p1430_p10, %p1756_p3  ;;  %p1439_p9 = por %p1438_p4, %p1437_p2 }
  0x51   : > { %p1433_p0 = pneg %p1432_p11 }
  0x53   : > { %p1440_p12 = pnand %p1439_p9, %p1433_p0 }
  0x55   : > { %1443 = shalt.err (!%p1440_p12)
}
  0x56   : > { %1253 = dma.hbm_to_vmem [thread:$0]  (!%p1740_p1), %s2029_s3, 1024, %s1744_s17, [#allocation7], %s1592_s26, %s1592_s26, %s1593_s20  }
  0x57   : > { %s1444_s25 = scalar_lea.hbm %s1997_s9, 1024 }
  0x58   : > { %p1445_p5 = scmp.ne.s32.totalorder %s1997_s9, %s1444_s25  ;;  %p1451_p10 = scmp.lt.u32.totalorder %s1444_s25, %s1997_s9 }
  0x5a   : > { %p1447_p6 = pnand %p1445_p5, %p1756_p3 }
  0x5c   : > { %p1448_p7 = pneg %p1447_p6 }
  0x5e   : > { %p1453_p11 = pnand %p1451_p10, %p1448_p7 }
  0x60   : > { %1456 = shalt.err (!%p1453_p11)
}
  0x61   : > { %s1457_s14 = scalar_lea.vmem %s350_s24, 1024  ;;  %p1465_p9 = scmp.lt.s32.totalorder %s350_s24, %s350_s24 }
  0x62   : > { %p1458_p0 = scmp.ne.s32.totalorder %s350_s24, %s1457_s14  ;;  %p1466_p12 = scmp.lt.s32.totalorder %s1457_s14, %s1457_s14 }
  0x64   : > { %p1460_p2 = pnand %p1458_p0, %p1756_p3  ;;  %p1467_p8 = por %p1466_p12, %p1465_p9 }
  0x66   : > { %p1461_p4 = pneg %p1460_p2 }
  0x68   : > { %p1468_p13 = pnand %p1467_p8, %p1461_p4 }
  0x6a   : > { %1471 = shalt.err (!%p1468_p13)
}
  0x6b   : > { %1259 = dma.hbm_to_vmem [thread:$0]  (!%p1740_p1), %s1997_s9, 1024, %s350_s24, [#allocation10], %s1592_s26, %s1592_s26, %s1593_s20  }
  0x6c   : > { %p2030_p5 = scmp.ne.s32.totalorder %s2026_s29, 0 }
  0x6d   : > { %p2031_p3 = scmp.eq.s32.totalorder (!%p2030_p5), %s1702_s0, 0 }
  0x6e   : > { %380 = sbr.rel (%p2030_p5) target bundleno = 1455 (0x5af), region = 64 }
  0x75   : > { %1551 = dma.done.wait (%p2031_p3), [#allocation7], 1024   ;;  %p2032_p6 = pmov %p2031_p3 }
  0x76   : > { %p2033_p8 = pmov %p2031_p3 }
  0x77   : > { %1553 = vsyncadd (%p2032_p6), [#allocation7], 4294966272 }
  0x78   : > { %1555 = dma.done.wait (%p2033_p8), [#allocation10], 2048   ;;  %p2034_p13 = pmov %p2031_p3 }
  0x79   : > { %s2014_s28 = sand.u32 1, %s1570_s19   ;;  %p426_p1 = scmp.lt.s32.totalorder %s1702_s0, 1 }
  0x7a   : > { %1557 = vsyncadd (%p2034_p13), [#allocation10], 4294965248  ;;  %s1842_s29 = sshll.u32 %s2014_s28, 3  ;;  %s1086_s15 = sshll.u32 %s1702_s0, 6 }
  0x7b   : > { %s1846_s24 = scalar_select %p426_p1, %s1702_s0, 1 }
  0x7c   : > { %s1853_s27 = smov 0  }
  0x7d LB: >> { %s437_s25 = sadd.s32 %s1582_s27, %s1086_s15  ;;  %s441_s16 = scalar_lea.vmem [#allocation2], %s1582_s27  ;;  %s1582_s27 = sphi %s1853_s27, %s436_s27  }
  0x7e   : >> { %s438_s30 = sld [smem:[#allocation5 + %s437_s25]]  ;;  %s449_s22 = sshll.u32 %s441_s16, 4  ;;  %s450_s22 = int_to_ptr.vmem [resolvable:$true] %s449_s22 }
  0x7f   : >> { %s1474_s21 = scalar_lea.hbm %s1990_s2, 1664 }
  0x84   : >> { %s1087_s23 = sshll.u32 %s438_s30, 4 }
  0x85   : >> { %s440_s13 = scalar_lea.hbm %s1990_s2, %s1087_s23 }
  0x86   : >> { %s1472_s26 = scalar_lea.hbm %s440_s13, 16  ;;  %p1475_p10 = scmp.lt.u32.totalorder %s440_s13, %s1990_s2 }
  0x87   : >> { %p1473_p7 = scmp.ne.s32.totalorder %s440_s13, %s1472_s26  ;;  %p1476_p11 = scmp.lt.u32.totalorder %s1474_s21, %s1472_s26 }
  0x88   : >> { %p1478_p2 = scmp.lt.u32.totalorder %s1472_s26, %s440_s13 }
  0x89   : >> { %p1477_p0 = por %p1476_p11, %p1475_p10 }
  0x8b   : >> { %p1479_p4 = por %p1478_p2, %p1477_p0 }
  0x8d   : >> { %p1480_p9 = pnand %p1479_p4, %p1473_p7 }
  0x8f   : >> { %1483 = shalt.err (!%p1480_p9)  }
  0x90   : >> { %s1484_s25 = scalar_lea.vmem %s450_s22, 16  ;;  %s1594_s30 = smov [#allocation2]  }
  0x91   : >> { %p1485_p12 = scmp.ne.s32.totalorder %s450_s22, %s1484_s25  ;;  %s1486_s16 = sshll.u32 %s1594_s30, 4  ;;  %s1487_s16 = int_to_ptr.vmem [resolvable:$false] %s1486_s16 }
  0x92   : >> { %s1488_s23 = scalar_lea.vmem %s1487_s16, 1024  ;;  %p1489_p5 = scmp.lt.s32.totalorder %s450_s22, %s1487_s16 }
  0x93   : >> { %p1490_p3 = scmp.lt.s32.totalorder %s1488_s23, %s1484_s25 }
  0x95   : >> { %p1491_p6 = por %p1490_p3, %p1489_p5 }
  0x97   : >> { %p1492_p8 = pnand %p1491_p6, %p1485_p12 }
  0x99   : >> { %1495 = shalt.err (!%p1492_p8)  }
  0x9a   : >> { %452 = dma.hbm_to_vmem [thread:$0]  %s440_s13, 16, %s450_s22, [#allocation3] }
  0x9b   : >> { %s436_s27 = sadd.s32 1, %s1582_s27  }
  0x9c   : >> { %p433_p13 = scmp.ge.s32.totalorder %s436_s27, 64  }
  0x9d   : > { %s1584_s3 = smov (%p433_p13), 0  }
  0x9e   : > { %435 = sbr.rel (!%p433_p13) target bundleno = 125 (0x7d), region = 132 }
  0xa5 LB: >> { %1558 = dma.done.wait [#allocation3], 16  ;;  %s1586_s3 = sphi %s1584_s3, %s458_s3  }
  0xa6   : >> { %1559 = vsyncadd [#allocation3], 4294967280  ;;  %s458_s3 = sadd.s32 1, %s1586_s3  }
  0xa7   : >> { %p455_p1 = scmp.ge.s32.totalorder %s458_s3, 64  }
  0xa8   : > { %v1328_v0 = vld [vmem:[#allocation6] sm:$0xff] (%p455_p1)   ;;  %v1329_v1 = vld [vmem:[#allocation6 + $0x8] sm:$0xff] (%p455_p1)   ;;  %v1330_v2 = vld [vmem:[#allocation6 + $0x10] sm:$0xff] (%p455_p1)   ;;  %v1595_v20 = vmov (%p455_p1), 0.0   ;;  %v625_v21 = vlaneseq (%p455_p1)  ;;  %s2035_s18 = scalar_lea.vmem (%p455_p1), %s1989_s1, %s1846_s24  ;;  %vm1596_vm1 = vmmov (%p455_p1), 0   ;;  %vm631_vm2 = vcmask (%p455_p1), 523264  }
  0xa9   : > { %457 = sbr.rel (!%p455_p1) target bundleno = 165 (0xa5), region = 143  ;;  %1160 = vmatprep.subr.bf16.mxu0 (%p455_p1), %v1328_v0  ;;  %v1331_v3 = vld [vmem:[#allocation6 + $0x18] sm:$0xff] (%p455_p1)   ;;  %v463_v4 = vld [vmem:[#allocation2] sm:$0xff] (%p455_p1)  ;;  %v464_v5 = vld [vmem:[#allocation2 + $0x8] sm:$0xff] (%p455_p1)  ;;  %1184 = vmatprep.subr.bf16.mxu1 (%p455_p1), %v1595_v20  ;;  %s2036_s28 = sld [smem:[#allocation27_spill]] (%p455_p1) }
  0xaa   : > { %1161 = vmatpush3.bf16.msra.mxu0 (%p455_p1), %v1328_v0  ;;  %v471_v6 = vpack.c.bf16 (%p455_p1), %v464_v5, %v463_v4  ;;  %v1332_v7 = vld [vmem:[#allocation6 + $0x20] sm:$0xff] (%p455_p1)   ;;  %v1333_v8 = vld [vmem:[#allocation6 + $0x28] sm:$0xff] (%p455_p1)   ;;  %v1334_v9 = vld [vmem:[#allocation6 + $0x30] sm:$0xff] (%p455_p1)   ;;  %v1876_v22 = vshrl.u32 (%p455_p1), %v625_v21, 7  ;;  %1192 = vmatprep.mubr.msk.bf16.mxu1 (%p455_p1), %vm1596_vm1, %v1595_v20  ;;  %s1121_s15 = sshll.u32 (%p455_p1), %s1702_s0, 7  ;;  %s2038_s22 = sld [smem:[#allocation30_spill]] (%p455_p1) }
  0xab   : > { %1162 = vmatprep.subr.bf16.mxu0 (%p455_p1), %v1329_v1  ;;  %v1335_v10 = vld [vmem:[#allocation6 + $0x38] sm:$0xff] (%p455_p1)   ;;  %v465_v11 = vld [vmem:[#allocation2 + $0x10] sm:$0xff] (%p455_p1)  ;;  %v467_v13 = vld [vmem:[#allocation2 + $0x20] sm:$0xff] (%p455_p1)  ;;  %s2040_s13 = sand.u32 (%p455_p1), 1, %s1570_s19   ;;  %s1598_s20 = smov (%p455_p1), [#allocation12]  }
  0xac   : > { %1176 = vmatprep.mubr.bf16.mxu0 (%p455_p1), %v471_v6  ;;  %v466_v12 = vld [vmem:[#allocation2 + $0x18] sm:$0xff] (%p455_p1)  ;;  %v468_v14 = vld [vmem:[#allocation2 + $0x28] sm:$0xff] (%p455_p1)  ;;  %v469_v17 = vld [vmem:[#allocation2 + $0x30] sm:$0xff] (%p455_p1)  ;;  %v627_v24 = vsub.s32 (%p455_p1), 0, %v1876_v22  ;;  %s956_s26 = scalar_lea.sflag (%p455_p1), [#allocation8], %s2040_s13  ;;  %s1500_s25 = sshll.u32 (%p455_p1), %s1598_s20, 4  ;;  %s1501_s25 = int_to_ptr.vmem [resolvable:$false] %s1500_s25 }
  0xad   : > { %v472_v15 = vpack.c.bf16 (%p455_p1), %v466_v12, %v465_v11  ;;  %v473_v16 = vpack.c.bf16 (%p455_p1), %v468_v14, %v467_v13  ;;  %v470_v18 = vld [vmem:[#allocation2 + $0x38] sm:$0xff] (%p455_p1)  ;;  %v619_v23 = vld [vmem:[%s2035_s18] sm:$0x1] (%p455_p1)  ;;  %v1336_v60 = vld [vmem:[#allocation9] sm:$0xff] (%p455_p1)   ;;  %s2037_s18 = scalar_lea.vmem (%p455_p1), [#allocation12], %s1842_s29  ;;  %s1502_s30 = scalar_lea.vmem (%p455_p1), %s1501_s25, 256 }
  0xae   : > { %1163 = vmatpush3.bf16.msra.mxu0 (%p455_p1), %v1329_v1  ;;  %v474_v19 = vpack.c.bf16 (%p455_p1), %v470_v18, %v469_v17  ;;  %vm620_vm0 = vcmp.ne.s32.totalorder (%p455_p1), %v619_v23, 0  ;;  %v623_v27 = vld [vmem:[%s1999_s11] sm:$0xff] (%p455_p1)  ;;  %v1337_v61 = vld [vmem:[#allocation9 + $0x8] sm:$0xff] (%p455_p1)   ;;  %v1339_v63 = vld [vmem:[#allocation9 + $0x18] sm:$0xff] (%p455_p1)   ;;  %s969_s21 = sshll.u32 (%p455_p1), %s2037_s18, 4  ;;  %s2039_s17 = smov (%p455_p1), %s2037_s18  ;;  %s1944_s21 = int_to_ptr.vmem [resolvable:$true] %s969_s21 }
  0xaf   : > { %1164 = vmatprep.subr.bf16.mxu0 (%p455_p1), %v1330_v2  ;;  %v1097_v25 = vsel (%p455_p1), %vm620_vm0, 1.0, %v1595_v20  ;;  %v1088_v30 = vld [vmem:[%s1992_s4] ss:$0 sm:$0xff] (%p455_p1)  ;;  %v1340_v0 = vld [vmem:[#allocation9 + $0x20] sm:$0xff] (%p455_p1)   ;;  %v1341_v1 = vld [vmem:[#allocation9 + $0x28] sm:$0xff] (%p455_p1)   ;;  %s1496_s0 = scalar_lea.vmem (%p455_p1), %s1944_s21, 128  ;;  %p1503_p2 = scmp.lt.s32.totalorder (%p455_p1), %s1944_s21, %s1501_s25 }
  0xb0   : > { %v628_v26 = vrot.slane %v1097_v25, %v627_v24  ;;  %v1338_v62 = vld [vmem:[#allocation9 + $0x10] sm:$0xff]   ;;  %v1344_v21 = vld [vmem:[#allocation11] sm:$0xff]   ;;  %v1345_v23 = vld [vmem:[#allocation11 + $0x8] sm:$0xff]   ;;  %s1942_s14 = scalar_lea.hbm %s2038_s22, %s1121_s15  ;;  %p1497_p7 = scmp.ne.s32.totalorder %s1944_s21, %s1496_s0 }
  0xb1   : > { %v1099_v13 = vld [vmem:[%s1994_s6] ss:$0 sm:$0xff]  ;;  %p2041_p10 = scmp.ne.s32.totalorder %s2036_s28, 0  ;;  %p1504_p4 = scmp.lt.s32.totalorder %s1502_s30, %s1496_s0 }
  0xb2   : > { %1165 = vmatpush3.bf16.msra.mxu0 %v1330_v2  ;;  %v630_v28 = vmul.f32 %v628_v26, %v623_v27  ;;  %v1342_v2 = vld [vmem:[#allocation9 + $0x30] sm:$0xff]  }
  0xb3   : > { %1166 = vmatprep.subr.bf16.mxu0 %v1331_v3  ;;  %p1498_p11 = pnand %p1497_p7, %p2041_p10  ;;  %p1505_p9 = por %p1504_p4, %p1503_p2 }
  0xb4   : > { %v632_v29 = vsel %vm631_vm2, %v630_v28, 0.0  ;;  %v635_v59 = vpack.c.bf16 %v630_v28, %v630_v28 }
  0xb5   : > { %633 = vadd.xlane.f32.xlu0 %v632_v29  ;;  %v1346_v29 = vld [vmem:[#allocation11 + $0x10] sm:$0xff]   ;;  %p1499_p0 = pneg %p1498_p11 }
  0xb6   : > { %1167 = vmatpush3.bf16.msra.mxu0 %v1331_v3  ;;  %v1343_v3 = vld [vmem:[#allocation9 + $0x38] sm:$0xff]  }
  0xb7   : > { %1168 = vmatprep.subr.bf16.mxu0 %v1332_v7  ;;  %p1506_p12 = pnand %p1505_p9, %p1499_p0 }
  0xba   : > { %1169 = vmatpush3.bf16.msra.mxu0 %v1332_v7 }
  0xbb   : > { %1170 = vmatprep.subr.bf16.mxu0 %v1333_v8 }
  0xbe   : > { %1171 = vmatpush3.bf16.msra.mxu0 %v1333_v8 }
  0xbf   : > { %1172 = vmatprep.subr.bf16.mxu0 %v1334_v9 }
  0xc2   : > { %1173 = vmatpush3.bf16.msra.mxu0 %v1334_v9 }
  0xc3   : > { %1174 = vmatprep.subr.bf16.mxu0 %v1335_v10 }
  0xc6   : > { %1175 = vmatpush3.bf16.msra.mxu0 %v1335_v10 }
  0xc7   : > { %1216 = vmatprep.subr.bf16.mxu0 %v1595_v20 }
  0xc9   : > { %1177 = vmatmul.mubr.bf16.vlgmr.msra.gmra.mrb[0].mxu0 %v472_v15 }
  0xca   : > { %1180 = vmatprep.mubr.bf16.mxu0 %v473_v16  ;;  %1217 = vmatpush3.bf16.msra.mxu0 %v1344_v21 }
  0xcb   : > { %1218 = vmatprep.subr.bf16.mxu0 %v1595_v20 }
  0xce   : > { %1219 = vmatpush3.bf16.msra.mxu0 %v1345_v23 }
  0xcf   : > { %1220 = vmatprep.subr.bf16.mxu0 %v1595_v20 }
  0xd1   : > { %1181 = vmatmul.mubr.bf16.gmra.mrb[4].mxu0 %v474_v19 }
  0xd2   : > { %1232 = vmatprep.mubr.msk.bf16.mxu0 %vm1596_vm1, %v1595_v20  ;;  %1221 = vmatpush3.bf16.msra.mxu0 %v1346_v29 }
  0xd3   : > { %1222 = vmatprep.subr.bf16.mxu0 %v1595_v20 }
 0x142   : > { %v634_v4 = vpop.xlane.xlu0 %633 }
 0x143   : > { %v683_v5 = vmax.f32 %v634_v4, 1.0 }
 0x19c   : > { %v1178_v31 = vpop.f32.mrb[0].mxu0 }
 0x19d   : > { %v589_v32 = vadd.f32 %v1178_v31, %v1088_v30  ;;  %v580_v33 = vpop.f32.mrb[1].mxu0  ;;  %v1348_v31 = vld [vmem:[#allocation11 + $0x20] sm:$0xff]  }
 0x19e   : > { %v581_v34 = vadd.f32 %v1088_v30, %v580_v33  ;;  %v1179_v35 = vpop.f32.mrb[2].mxu0  ;;  %v1350_v33 = vld [vmem:[#allocation11 + $0x30] sm:$0xff]  }
 0x19f   : > { %1352 = vtanh.f32 %v589_v32  ;;  %v592_v36 = vadd.f32 %v1179_v35, %v1088_v30  ;;  %v583_v37 = vpop.f32.mrb[3].mxu0  ;;  %v1349_v32 = vld [vmem:[#allocation11 + $0x28] sm:$0xff]  }
 0x1a0   : > { %1354 = vtanh.f32 %v581_v34  ;;  %v584_v38 = vadd.f32 %v1088_v30, %v583_v37  ;;  %v1351_v34 = vld [vmem:[#allocation11 + $0x38] sm:$0xff]  }
 0x1a1   : > { %1356 = vtanh.f32 %v592_v36 }
 0x1a2   : > { %1358 = vtanh.f32 %v584_v38 }
 0x1a4   : > { %v1182_v39 = vpop.f32.mrb[4].mxu0 }
 0x1a5   : > { %v605_v40 = vadd.f32 %v1182_v39, %v1088_v30  ;;  %v596_v41 = vpop.f32.mrb[5].mxu0  ;;  %v1108_v39 = vld [vmem:[%s1995_s7] ss:$0 sm:$0xff] }
 0x1a6   : > { %v597_v42 = vadd.f32 %v1088_v30, %v596_v41  ;;  %v1183_v43 = vpop.f32.mrb[6].mxu0  ;;  %v1109_v41 = vld [vmem:[%s1996_s8] ss:$0 sm:$0xff] }
 0x1a7   : > { %1360 = vtanh.f32 %v605_v40  ;;  %v608_v44 = vadd.f32 %v1183_v43, %v1088_v30  ;;  %v599_v45 = vpop.f32.mrb[7].mxu0 }
 0x1a8   : > { %1362 = vtanh.f32 %v597_v42  ;;  %v600_v46 = vadd.f32 %v1088_v30, %v599_v45  ;;  %v1347_v30 = vld [vmem:[#allocation11 + $0x18] sm:$0xff]  }
 0x1a9   : > { %v1353_v47 = vpop.eup %1352  ;;  %1364 = vtanh.f32 %v608_v44  ;;  %1223 = vmatpush3.bf16.msra.mxu0 %v1347_v30 }
 0x1aa   : > { %v1355_v48 = vpop.eup %1354  ;;  %1366 = vtanh.f32 %v600_v46  ;;  %1224 = vmatprep.subr.bf16.mxu0 %v1595_v20 }
 0x1ab   : > { %v1357_v49 = vpop.eup %1356  ;;  %1368 = vrcp.f32 %v683_v5 }
 0x1ac   : > { %v1359_v50 = vpop.eup %1358  ;;  %v637_v51 = vpack.c.bf16 %v1357_v49, %v1353_v47 }
 0x1ad   : > { %v636_v52 = vpack.c.bf16 %v1359_v50, %v1355_v48  ;;  %1225 = vmatpush3.bf16.msra.mxu0 %v1348_v31 }
 0x1ae   : > { %1226 = vmatprep.subr.bf16.mxu0 %v1595_v20 }
 0x1af   : > { %1185 = vmatpush3.bf16.msra.mxu1 %v636_v52 }
 0x1b0   : > { %1186 = vmatprep.subr.bf16.mxu1 %v1595_v20 }
 0x1b1   : > { %v1361_v53 = vpop.eup %1360  ;;  %1227 = vmatpush3.bf16.msra.mxu0 %v1349_v32 }
 0x1b2   : > { %v1363_v54 = vpop.eup %1362  ;;  %1228 = vmatprep.subr.bf16.mxu0 %v1595_v20 }
 0x1b3   : > { %v1365_v55 = vpop.eup %1364  ;;  %1187 = vmatpush3.bf16.msra.mxu1 %v637_v51  ;;  %v939_v51 = vld [vmem:[%s2000_s12] sm:$0x1] }
 0x1b4   : > { %v1367_v56 = vpop.eup %1366  ;;  %1188 = vmatprep.subr.bf16.mxu1 %v1595_v20  ;;  %v639_v57 = vpack.c.bf16 %v1365_v55, %v1361_v53  ;;  %vm940_vm3 = vcmp.gt.f32.partialorder %v939_v51, 0.5 }
 0x1b5   : > { %v638_v58 = vpack.c.bf16 %v1367_v56, %v1363_v54  ;;  %v1369_v6 = vpop.eup %1368  ;;  %1229 = vmatpush3.bf16.msra.mxu0 %v1350_v33  ;;  %v1597_v54 = vmov 0  }
 0x1b6   : > { %1230 = vmatprep.subr.bf16.mxu0 %v1595_v20  ;;  %v947_v55 = vsel %vm940_vm3, 1, %v1597_v54 }
 0x1b7   : > { %1189 = vmatpush3.bf16.msra.mxu1 %v638_v58  ;;  %v951_v56 = vrot.slane %v947_v55, %v627_v24 }
 0x1b8   : > { %1190 = vmatprep.subr.bf16.mxu1 %v1595_v20 }
 0x1b9   : > { %1231 = vmatpush3.bf16.msra.mxu0 %v1351_v34  ;;  %vm952_vm4 = vcmp.eq.s32.totalorder %v951_v56, 1 }
 0x1bb   : > { %1191 = vmatpush3.bf16.msra.mxu1 %v639_v57 }
 0x1bc   : > { %1196 = vmatprep.subr.bf16.mxu1 %v1595_v20 }
 0x1be   : > { %1193 = vmatmul.mubr.msk.bf16.vlgmr.msra.gmra.mrb[0].mxu1 %vm631_vm2, %v635_v59 }
 0x1bf   : > { %1197 = vmatpush3.bf16.msra.mxu1 %v1336_v60  ;;  %1212 = vmatprep.mubr.msk.bf16.mxu1 %vm1596_vm1, %v1595_v20 }
 0x1c0   : > { %1198 = vmatprep.subr.bf16.mxu1 %v1595_v20 }
 0x1c3   : > { %1199 = vmatpush3.bf16.msra.mxu1 %v1337_v61 }
 0x1c4   : > { %1200 = vmatprep.subr.bf16.mxu1 %v1595_v20 }
 0x1c7   : > { %1201 = vmatpush3.bf16.msra.mxu1 %v1338_v62 }
 0x1c8   : > { %1202 = vmatprep.subr.bf16.mxu1 %v1595_v20 }
 0x1cb   : > { %1203 = vmatpush3.bf16.msra.mxu1 %v1339_v63 }
 0x1cc   : > { %1204 = vmatprep.subr.bf16.mxu1 %v1595_v20 }
 0x1cf   : > { %1205 = vmatpush3.bf16.msra.mxu1 %v1340_v0 }
 0x1d0   : > { %1206 = vmatprep.subr.bf16.mxu1 %v1595_v20 }
 0x1d3   : > { %1207 = vmatpush3.bf16.msra.mxu1 %v1341_v1 }
 0x1d4   : > { %1208 = vmatprep.subr.bf16.mxu1 %v1595_v20 }
 0x1d7   : > { %1209 = vmatpush3.bf16.msra.mxu1 %v1342_v2 }
 0x1d8   : > { %1210 = vmatprep.subr.bf16.mxu1 %v1595_v20  ;;  %v1110_v20 = vld [vmem:[%s1998_s10] ss:$0 sm:$0xff] }
 0x1db   : > { %1211 = vmatpush3.bf16.msra.mxu1 %v1343_v3 }
 0x291   : > { %v677_v7 = vpop.f32.mrb[0].mxu1 }
 0x292   : > { %v685_v8 = vmul.f32 %v1369_v6, %v677_v7  ;;  %v1194_v9 = vpop.f32.mrb[1].mxu1 }
 0x293   : > { %v680_v10 = vpop.f32.mrb[2].mxu1 }
 0x294   : > { %v686_v11 = vpack.c.bf16 %v685_v8, %v685_v8  ;;  %v1195_v12 = vpop.f32.mrb[3].mxu1 }
 0x296   : > { %1213 = vmatmul.mubr.bf16.vlgmr.msra.gmra.mrb[4].mxu1 %v686_v11 }
 0x369   : > { %v792_v14 = vpop.f32.mrb[4].mxu1 }
 0x36a   : > { %v793_v15 = vadd.f32 %v1099_v13, %v792_v14  ;;  %v1214_v16 = vpop.f32.mrb[5].mxu1 }
 0x36b   : > { %v795_v17 = vpop.f32.mrb[6].mxu1 }
 0x36c   : > { %1370 = vtanh.f32 %v793_v15  ;;  %v1215_v18 = vpop.f32.mrb[7].mxu1 }
 0x376   : > { %v1371_v19 = vpop.eup %1370 }
 0x377   : > { %799 = vadd.xlane.f32.xlu0 %v1371_v19 }
 0x404   : > { %v800_v25 = vpop.xlane.xlu0 %799 }
 0x405   : > { %v802_v26 = vmul.f32 0.0078125, %v800_v25 }
 0x407   : > { %v803_v27 = vsub.f32 %v1371_v19, %v802_v26 }
 0x409   : > { %v804_v28 = vmul.f32 %v803_v27, %v803_v27 }
 0x40b   : > { %805 = vadd.xlane.f32.xlu1 %v804_v28 }
 0x498   : > { %v806_v35 = vpop.xlane.xlu1 %805 }
 0x499   : > { %v807_v36 = vmul.f32 0.0078125, %v806_v35 }
 0x49b   : > { %v808_v37 = vadd.f32 1e-05, %v807_v36 }
 0x49d   : > { %1372 = vrsqrt.f32 %v808_v37 }
 0x4a7   : > { %v1373_v38 = vpop.eup %1372 }
 0x4a8   : > { %v810_v40 = vmul.f32 %v1373_v38, %v803_v27 }
 0x4aa   : > { %v818_v42 = vmul.f32 %v1108_v39, %v810_v40 }
 0x4ac   : > { %v826_v43 = vadd.f32 %v1109_v41, %v818_v42 }
 0x4ae   : > { %v827_v44 = vpack.c.bf16 %v826_v43, %v826_v43 }
 0x4b0   : > { %1233 = vmatmul.mubr.bf16.vlgmr.msra.gmra.mrb[8].mxu0 %v827_v44 }
 0x583   : > { %v933_v45 = vpop.f32.mrb[8].mxu0 }
 0x584   : > { %v934_v46 = vadd.f32 %v1110_v20, %v933_v45  ;;  %v1234_v47 = vpop.f32.mrb[9].mxu0 }
 0x585   : > { %v936_v48 = vpop.f32.mrb[10].mxu0 }
 0x586   : > { %v1119_v49 = vmul.f32 -1.442695, %v934_v46  ;;  %v1235_v50 = vpop.f32.mrb[11].mxu0 }
 0x588   : > { %1374 = vpow2.f32 %v1119_v49 }
 0x592   : > { %v1375_v52 = vpop.eup %1374 }
 0x593   : > { %v944_v53 = vadd.f32 1.0, %v1375_v52 }
 0x595   : > { %1376 = vrcp.f32 %v944_v53 }
 0x59f   : > { %v1377_v57 = vpop.eup %1376 }
 0x5a0   : > { %v953_v58 = vsel %vm952_vm4, %v1377_v57, %v934_v46 }
 0x5a1   : > { %954 = vst [vmem:[%s2039_s17] sm:$0xff] %v953_v58 }
 0x5a2   : > { %1509 = shalt.err (!%p1506_p12)
}
 0x5a3   : > { %s1510_s29 = scalar_lea.hbm %s1942_s14, 128  ;;  %s1514_s3 = scalar_lea.hbm %s2038_s22, 256 }
 0x5a4   : > { %p1511_p5 = scmp.ne.s32.totalorder %s1942_s14, %s1510_s29  ;;  %p1515_p8 = scmp.lt.u32.totalorder %s1942_s14, %s2038_s22 }
 0x5a5   : > { %p1516_p13 = scmp.lt.u32.totalorder %s1514_s3, %s1510_s29  ;;  %p1518_p7 = scmp.lt.u32.totalorder %s1510_s29, %s1942_s14 }
 0x5a6   : > { %p1512_p3 = pnand %p1511_p5, %p2041_p10 }
 0x5a7   : > { %p1517_p1 = por %p1516_p13, %p1515_p8 }
 0x5a8   : > { %p1513_p6 = pneg %p1512_p3 }
 0x5a9   : > { %p1519_p11 = por %p1518_p7, %p1517_p1 }
 0x5ab   : > { %p1520_p0 = pnand %p1519_p11, %p1513_p6 }
 0x5ad   : > { %1523 = shalt.err (!%p1520_p0)
}
 0x5ae   : > { %1248 = dma.vmem_to_hbm [thread:$0]  (%p2041_p10), %s1944_s21, 128, %s1942_s14, %s956_s26  }
 0x5af PF: > { %s2042_s27 = sld [smem:[#allocation24_spill]]  ;;  %s2043_s24 = sld [smem:[#allocation22_spill]] }
 0x5b0   : > { %s2044_s17 = sld [smem:[#allocation28_spill]] }
 0x5b5   : > { %p1270_p2 = scmp.ge.s32.totalorder %s2042_s27, 2  ;;  %s981_s13 = sand.u32 1, %s2043_s24  }
 0x5b6   : > { %p2045_p4 = scmp.ne.s32.totalorder %s2044_s17, 0  ;;  %s982_s0 = scalar_lea.sflag [#allocation8], %s981_s13 }
 0x5b8   : > { %p1261_p9 = pnand %p1270_p2, %p2045_p4 }
 0x5ba   : > { %1561 = dma.done.wait (!%p1261_p9), %s982_s0, 128  }
 0x5bb   : > { %1563 = vsyncadd (!%p1261_p9), %s982_s0, 4294967168  ;;  %s2046_s21 = sld [smem:[#allocation25_spill]]  ;;  %s2047_s20 = sld [smem:[#allocation23_spill]] }
 0x5bc   : > { %s2048_s25 = sld [smem:[#allocation26_spill]]  ;;  %s2049_s18 = smov %s1570_s19 }
 0x5c1   : > { %p29_p12 = scmp.ge.s32.totalorder %s2046_s21, 4   ;;  %s2050_s19 = smov %s2047_s20 }
 0x5c2   : > { %s2051_s20 = smov %s2048_s25 }
 0x5c3   :  { %31 = sbr.rel (!%p29_p12) target bundleno = 18 (0x12), region = 154 }
 0x5ca   :  { %987 = vsyncpa [#allocation7], 1 }
 0x5cb   :  { %989 = vsyncpa [#allocation7 + $0x1], 1 }
 0x5cc   :  { %990 = vsyncpa [#allocation10], 1 }
 0x5cd   :  { %991 = vsyncpa [#allocation8], 1 }
 0x5ce   :  { %993 = vsyncpa [#allocation8 + $0x1], 1 }
 0x5cf   :  { %994 = vsyncmov [#allocation3] }
 0x5d2   :  { %s995_s28 = vpop.sfrf %994 }
 0x5d3   :  { %p1124_p10 = scmp.ne.s32.totalorder %s995_s28, 0 }
 0x5d5   :  { %999 = shalt.err (%p1124_p10)  }

// kernel: tpu_custom_call.1
= control target key start
LH: loop header
LB: loop body
LE: loop exit
PB: predicated region body
PF: predicated region fallthrough
CT: control target
= control target key end

     0   :  { %s1988_s0 = inlined_call_operand.hbm [shape: s32[128], index: 0, kind: input, shape index: {}]   ;;  %s1989_s1 = inlined_call_operand.vmem [shape: s32[2,1,64], index: 1, kind: input, shape index: {}]   ;;  %s1990_s2 = inlined_call_operand.hbm [shape: f32[100,128], index: 2, kind: input, shape index: {}]   ;;  %s1991_s3 = inlined_call_operand.hbm [shape: bf16[128,128], index: 3, kind: input, shape index: {}]   ;;  %s1992_s4 = inlined_call_operand.vmem [shape: f32[1,128], index: 4, kind: input, shape index: {}]   ;;  %s1993_s5 = inlined_call_operand.hbm [shape: bf16[128,128], index: 5, kind: input, shape index: {}]   ;;  %s1994_s6 = inlined_call_operand.vmem [shape: f32[1,128], index: 6, kind: input, shape index: {}]   ;;  %s1995_s7 = inlined_call_operand.vmem [shape: f32[1,128], index: 7, kind: input, shape index: {}]   ;;  %s1996_s8 = inlined_call_operand.vmem [shape: f32[1,128], index: 8, kind: input, shape index: {}]   ;;  %s1997_s9 = inlined_call_operand.hbm [shape: bf16[128,128], index: 9, kind: input, shape index: {}]   ;;  %s1998_s10 = inlined_call_operand.vmem [shape: f32[1,128], index: 10, kind: input, shape index: {}]   ;;  %s1999_s11 = inlined_call_operand.vmem [shape: f32[8,64], index: 11, kind: input, shape index: {}]   ;;  %s2000_s12 = inlined_call_operand.vmem [shape: f32[1,128], index: 12, kind: input, shape index: {}]   ;;  %s2001_s13 = inlined_call_operand.hbm [shape: f32[16,128], index: 13, kind: output, shape index: {}]  }
   0x1   :  { %2015 = sst [smem:[#allocation29_spill]] %s1991_s3  ;;  %s1378_s27 = scalar_lea.hbm %s1988_s0, 16 }
   0x2   :  { %2016 = sst [smem:[#allocation30_spill]] %s2001_s13  ;;  %p1379_p0 = scmp.ne.s32.totalorder %s1988_s0, %s1378_s27 }
   0x3   :  { %p1382_p1 = scmp.lt.u32.totalorder %s1378_s27, %s1988_s0 }
   0x5   :  { %p1384_p2 = pnand %p1382_p1, %p1379_p0 }
   0x7   :  { %1387 = shalt.err (!%p1384_p2)  }
   0x8   :  { %s1588_s15 = smov [#allocation5]  }
   0x9   :  { %19 = dma.hbm_to_smem %s1988_s0, 16, %s1588_s15, [#allocation4] }
   0xa   :  { %1548 = dma.done.wait [#allocation4], 16 }
   0xb   :  { %1549 = vsyncadd [#allocation4], 4294967280 }
   0xc   :  { %21 = sfence }
   0xd   :  { %22 = vsyncpa [#allocation7], 0 }
   0xe   :  { %23 = vsyncpa [#allocation10], 0 }
   0xf   :  { %24 = vsyncpa [#allocation8], 0 }
  0x10   :  { %26 = vsyncpa [#allocation8 + $0x1], 0  ;;  %s1681_s18 = smov 0   ;;  %s1683_s19 = smov 0  }
  0x11   :  { %s1685_s20 = smov 0   ;;  %s1687_s21 = smov 0  }
  0x12 LB: > { %2017 = sst [smem:[#allocation22_spill]] %s1566_s18  ;;  %s1702_s0 = sadd.s32 4294967295, %s1578_s21   ;;  %s1578_s21 = sphi %s1687_s21, %s2046_s21   ;;  %s1574_s20 = sphi %s1685_s20, %s2051_s20   ;;  %s1570_s19 = sphi %s1683_s19, %s2050_s19   ;;  %s1566_s18 = sphi %s1681_s18, %s2049_s18  }
  0x13   : > { %2018 = sst [smem:[#allocation23_spill]] %s1574_s20  ;;  %s1075_s22 = sadd.s32 4294967294, %s1578_s21  }
  0x14   : > { %2019 = sst [smem:[#allocation24_spill]] %s1578_s21  ;;  %s1706_s23 = sadd.s32 1, %s1578_s21  }
  0x15   : > { %2020 = sst [smem:[#allocation25_spill]] %s1706_s23  ;;  %s275_s24 = sadd.s32 1, %s1574_s20 }
  0x16   : > { %s272_s25 = ssub.s32 %s1578_s21, %s1706_s23  ;;  %p285_p3 = scmp.ne.s32.totalorder %s1574_s20, %s1570_s19 }
  0x17   : > { %p273_p4 = scmp.eq.s32.totalorder %s272_s25, 0  ;;  %p286_p5 = scmp.eq.s32.totalorder %s1702_s0, 1 }
  0x18   : > { %p291_p6 = scmp.ne.s32.totalorder %s1570_s19, %s1566_s18  ;;  %p292_p7 = scmp.eq.s32.totalorder %s1075_s22, 1 }
  0x19   : > { %s1717_s26 = scalar_select %p273_p4, %s1574_s20, %s275_s24  }
  0x1a   : > { %p1719_p8 = por %p286_p5, %p285_p3  ;;  %p1723_p9 = por %p292_p7, %p291_p6 }
  0x1b   : > { %2021 = sst [smem:[#allocation26_spill]] %s1717_s26  ;;  %p1076_p10 = scmp.ge.s32.totalorder %s1578_s21, 1 }
  0x1c   : > { %s2022_s27 = scalar_select %p1719_p8, 1, 0 }
  0x1d   : > { %s2024_s28 = scalar_select %p1723_p9, 1, 0 }
  0x1e   : > { %2023 = sst [smem:[#allocation27_spill]] %s2022_s27  ;;  %p299_p11 = scmp.lt.s32.totalorder %s1578_s21, 3 }
  0x1f   : > { %2025 = sst [smem:[#allocation28_spill]] %s2024_s28  ;;  %p2006_p12 = scmp.eq.s32.totalorder %s1702_s0, 0 }
  0x20   : > { %p1730_p13 = pnand %p1076_p10, %p299_p11  ;;  %s1589_s30 = smov [#allocation9]  }
  0x21   : > { %s327_s14 = sshll.u32 %s1589_s30, 4  ;;  %s1590_s16 = smov [#allocation6]   ;;  %s1736_s14 = int_to_ptr.vmem [resolvable:$true] %s327_s14 }
  0x22   : > { %s2026_s29 = scalar_select %p1730_p13, 1, 0 }
  0x23   : > { %p1250_p0 = pneg %p1730_p13  ;;  %s311_s17 = sshll.u32 %s1590_s16, 4  ;;  %s1744_s17 = int_to_ptr.vmem [resolvable:$true] %s311_s17 }
  0x24   : > { %s1591_s22 = smov [#allocation11]   ;;  %s1388_s20 = scalar_lea.hbm %s1993_s5, 1024 }
  0x25   : > { %p1740_p1 = pnand %p2006_p12, %p1250_p0  ;;  %s1746_s24 = sshll.u32 %s1591_s22, 4  ;;  %s350_s24 = int_to_ptr.vmem [resolvable:$true] %s1746_s24 }
  0x26   : > { %p1389_p2 = scmp.ne.s32.totalorder %s1993_s5, %s1388_s20  ;;  %p1395_p6 = scmp.lt.u32.totalorder %s1388_s20, %s1993_s5 }
  0x27   : > { %p1756_p3 = pneg %p1740_p1 }
  0x29   : > { %p1391_p4 = pnand %p1756_p3, %p1389_p2 }
  0x2b   : > { %p1392_p5 = pneg %p1391_p4 }
  0x2d   : > { %p1397_p7 = pnand %p1395_p6, %p1392_p5 }
  0x2f   : > { %1400 = shalt.err (!%p1397_p7)
}
  0x30   : > { %s1401_s23 = scalar_lea.vmem %s1736_s14, 1024  ;;  %p1409_p12 = scmp.lt.s32.totalorder %s1736_s14, %s1736_s14 }
  0x31   : > { %p1402_p10 = scmp.ne.s32.totalorder %s1736_s14, %s1401_s23  ;;  %p1410_p9 = scmp.lt.s32.totalorder %s1401_s23, %s1401_s23 }
  0x33   : > { %p1404_p11 = pnand %p1402_p10, %p1756_p3  ;;  %p1411_p2 = por %p1410_p9, %p1409_p12 }
  0x35   : > { %p1405_p0 = pneg %p1404_p11 }
  0x37   : > { %p1412_p4 = pnand %p1411_p2, %p1405_p0 }
  0x39   : > { %1415 = shalt.err (!%p1412_p4)
}
  0x3a   : > { %s1592_s26 = smov 64   ;;  %s1593_s20 = smov 4  }
  0x3b   : > { %1256 = dma.hbm_to_vmem [thread:$0]  (!%p1740_p1), %s1993_s5, 1024, %s1736_s14, [#allocation10], %s1592_s26, %s1592_s26, %s1593_s20  }
  0x3c   : > { %s2029_s3 = sld [smem:[#allocation29_spill]] }
  0x42   : > { %s1416_s23 = scalar_lea.hbm %s2029_s3, 1024 }
  0x43   : > { %p1417_p9 = scmp.ne.s32.totalorder %s2029_s3, %s1416_s23  ;;  %p1423_p6 = scmp.lt.u32.totalorder %s1416_s23, %s2029_s3 }
  0x45   : > { %p1419_p12 = pnand %p1417_p9, %p1756_p3 }
  0x47   : > { %p1420_p5 = pneg %p1419_p12 }
  0x49   : > { %p1425_p7 = pnand %p1423_p6, %p1420_p5 }
  0x4b   : > { %1428 = shalt.err (!%p1425_p7)
}
  0x4c   : > { %s1429_s14 = scalar_lea.vmem %s1744_s17, 1024  ;;  %p1437_p2 = scmp.lt.s32.totalorder %s1744_s17, %s1744_s17 }
  0x4d   : > { %p1430_p10 = scmp.ne.s32.totalorder %s1744_s17, %s1429_s14  ;;  %p1438_p4 = scmp.lt.s32.totalorder %s1429_s14, %s1429_s14 }
  0x4f   : > { %p1432_p11 = pnand %p1430_p10, %p1756_p3  ;;  %p1439_p9 = por %p1438_p4, %p1437_p2 }
  0x51   : > { %p1433_p0 = pneg %p1432_p11 }
  0x53   : > { %p1440_p12 = pnand %p1439_p9, %p1433_p0 }
  0x55   : > { %1443 = shalt.err (!%p1440_p12)
}
  0x56   : > { %1253 = dma.hbm_to_vmem [thread:$0]  (!%p1740_p1), %s2029_s3, 1024, %s1744_s17, [#allocation7], %s1592_s26, %s1592_s26, %s1593_s20  }
  0x57   : > { %s1444_s25 = scalar_lea.hbm %s1997_s9, 1024 }
  0x58   : > { %p1445_p5 = scmp.ne.s32.totalorder %s1997_s9, %s1444_s25  ;;  %p1451_p10 = scmp.lt.u32.totalorder %s1444_s25, %s1997_s9 }
  0x5a   : > { %p1447_p6 = pnand %p1445_p5, %p1756_p3 }
  0x5c   : > { %p1448_p7 = pneg %p1447_p6 }
  0x5e   : > { %p1453_p11 = pnand %p1451_p10, %p1448_p7 }
  0x60   : > { %1456 = shalt.err (!%p1453_p11)
}
  0x61   : > { %s1457_s14 = scalar_lea.vmem %s350_s24, 1024  ;;  %p1465_p9 = scmp.lt.s32.totalorder %s350_s24, %s350_s24 }
  0x62   : > { %p1458_p0 = scmp.ne.s32.totalorder %s350_s24, %s1457_s14  ;;  %p1466_p12 = scmp.lt.s32.totalorder %s1457_s14, %s1457_s14 }
  0x64   : > { %p1460_p2 = pnand %p1458_p0, %p1756_p3  ;;  %p1467_p8 = por %p1466_p12, %p1465_p9 }
  0x66   : > { %p1461_p4 = pneg %p1460_p2 }
  0x68   : > { %p1468_p13 = pnand %p1467_p8, %p1461_p4 }
  0x6a   : > { %1471 = shalt.err (!%p1468_p13)
}
  0x6b   : > { %1259 = dma.hbm_to_vmem [thread:$0]  (!%p1740_p1), %s1997_s9, 1024, %s350_s24, [#allocation10], %s1592_s26, %s1592_s26, %s1593_s20  }
  0x6c   : > { %p2030_p5 = scmp.ne.s32.totalorder %s2026_s29, 0 }
  0x6d   : > { %p2031_p3 = scmp.eq.s32.totalorder (!%p2030_p5), %s1702_s0, 0 }
  0x6e   : > { %380 = sbr.rel (%p2030_p5) target bundleno = 1455 (0x5af), region = 64 }
  0x75   : > { %1551 = dma.done.wait (%p2031_p3), [#allocation7], 1024   ;;  %p2032_p6 = pmov %p2031_p3 }
  0x76   : > { %p2033_p8 = pmov %p2031_p3 }
  0x77   : > { %1553 = vsyncadd (%p2032_p6), [#allocation7], 4294966272 }
  0x78   : > { %1555 = dma.done.wait (%p2033_p8), [#allocation10], 2048   ;;  %p2034_p13 = pmov %p2031_p3 }
  0x79   : > { %s2014_s28 = sand.u32 1, %s1570_s19   ;;  %p426_p1 = scmp.lt.s32.totalorder %s1702_s0, 1 }
  0x7a   : > { %1557 = vsyncadd (%p2034_p13), [#allocation10], 4294965248  ;;  %s1842_s29 = sshll.u32 %s2014_s28, 3  ;;  %s1086_s15 = sshll.u32 %s1702_s0, 6 }
  0x7b   : > { %s1846_s24 = scalar_select %p426_p1, %s1702_s0, 1 }
  0x7c   : > { %s1853_s27 = smov 0  }
  0x7d LB: >> { %s437_s25 = sadd.s32 %s1582_s27, %s1086_s15  ;;  %s441_s16 = scalar_lea.vmem [#allocation2], %s1582_s27  ;;  %s1582_s27 = sphi %s1853_s27, %s436_s27  }
  0x7e   : >> { %s438_s30 = sld [smem:[#allocation5 + %s437_s25]]  ;;  %s449_s22 = sshll.u32 %s441_s16, 4  ;;  %s450_s22 = int_to_ptr.vmem [resolvable:$true] %s449_s22 }
  0x7f   : >> { %s1474_s21 = scalar_lea.hbm %s1990_s2, 1664 }
  0x84   : >> { %s1087_s23 = sshll.u32 %s438_s30, 4 }
  0x85   : >> { %s440_s13 = scalar_lea.hbm %s1990_s2, %s1087_s23 }
  0x86   : >> { %s1472_s26 = scalar_lea.hbm %s440_s13, 16  ;;  %p1475_p10 = scmp.lt.u32.totalorder %s440_s13, %s1990_s2 }
  0x87   : >> { %p1473_p7 = scmp.ne.s32.totalorder %s440_s13, %s1472_s26  ;;  %p1476_p11 = scmp.lt.u32.totalorder %s1474_s21, %s1472_s26 }
  0x88   : >> { %p1478_p2 = scmp.lt.u32.totalorder %s1472_s26, %s440_s13 }
  0x89   : >> { %p1477_p0 = por %p1476_p11, %p1475_p10 }
  0x8b   : >> { %p1479_p4 = por %p1478_p2, %p1477_p0 }
  0x8d   : >> { %p1480_p9 = pnand %p1479_p4, %p1473_p7 }
  0x8f   : >> { %1483 = shalt.err (!%p1480_p9)  }
  0x90   : >> { %s1484_s25 = scalar_lea.vmem %s450_s22, 16  ;;  %s1594_s30 = smov [#allocation2]  }
  0x91   : >> { %p1485_p12 = scmp.ne.s32.totalorder %s450_s22, %s1484_s25  ;;  %s1486_s16 = sshll.u32 %s1594_s30, 4  ;;  %s1487_s16 = int_to_ptr.vmem [resolvable:$false] %s1486_s16 }
  0x92   : >> { %s1488_s23 = scalar_lea.vmem %s1487_s16, 1024  ;;  %p1489_p5 = scmp.lt.s32.totalorder %s450_s22, %s1487_s16 }
  0x93   : >> { %p1490_p3 = scmp.lt.s32.totalorder %s1488_s23, %s1484_s25 }
  0x95   : >> { %p1491_p6 = por %p1490_p3, %p1489_p5 }
  0x97   : >> { %p1492_p8 = pnand %p1491_p6, %p1485_p12 }
  0x99   : >> { %1495 = shalt.err (!%p1492_p8)  }
  0x9a   : >> { %452 = dma.hbm_to_vmem [thread:$0]  %s440_s13, 16, %s450_s22, [#allocation3] }
  0x9b   : >> { %s436_s27 = sadd.s32 1, %s1582_s27  }
  0x9c   : >> { %p433_p13 = scmp.ge.s32.totalorder %s436_s27, 64  }
  0x9d   : > { %s1584_s3 = smov (%p433_p13), 0  }
  0x9e   : > { %435 = sbr.rel (!%p433_p13) target bundleno = 125 (0x7d), region = 132 }
  0xa5 LB: >> { %1558 = dma.done.wait [#allocation3], 16  ;;  %s1586_s3 = sphi %s1584_s3, %s458_s3  }
  0xa6   : >> { %1559 = vsyncadd [#allocation3], 4294967280  ;;  %s458_s3 = sadd.s32 1, %s1586_s3  }
  0xa7   : >> { %p455_p1 = scmp.ge.s32.totalorder %s458_s3, 64  }
  0xa8   : > { %v1328_v0 = vld [vmem:[#allocation6] sm:$0xff] (%p455_p1)   ;;  %v1329_v1 = vld [vmem:[#allocation6 + $0x8] sm:$0xff] (%p455_p1)   ;;  %v1330_v2 = vld [vmem:[#allocation6 + $0x10] sm:$0xff] (%p455_p1)   ;;  %v1595_v20 = vmov (%p455_p1), 0.0   ;;  %v625_v21 = vlaneseq (%p455_p1)  ;;  %s2035_s18 = scalar_lea.vmem (%p455_p1), %s1989_s1, %s1846_s24  ;;  %vm1596_vm1 = vmmov (%p455_p1), 0   ;;  %vm631_vm2 = vcmask (%p455_p1), 523264  }
  0xa9   : > { %457 = sbr.rel (!%p455_p1) target bundleno = 165 (0xa5), region = 143  ;;  %1160 = vmatprep.subr.bf16.mxu0 (%p455_p1), %v1328_v0  ;;  %v1331_v3 = vld [vmem:[#allocation6 + $0x18] sm:$0xff] (%p455_p1)   ;;  %v463_v4 = vld [vmem:[#allocation2] sm:$0xff] (%p455_p1)  ;;  %v464_v5 = vld [vmem:[#allocation2 + $0x8] sm:$0xff] (%p455_p1)  ;;  %1184 = vmatprep.subr.bf16.mxu1 (%p455_p1), %v1595_v20  ;;  %s2036_s28 = sld [smem:[#allocation27_spill]] (%p455_p1) }
  0xaa   : > { %1161 = vmatpush3.bf16.msra.mxu0 (%p455_p1), %v1328_v0  ;;  %v471_v6 = vpack.c.bf16 (%p455_p1), %v464_v5, %v463_v4  ;;  %v1332_v7 = vld [vmem:[#allocation6 + $0x20] sm:$0xff] (%p455_p1)   ;;  %v1333_v8 = vld [vmem:[#allocation6 + $0x28] sm:$0xff] (%p455_p1)   ;;  %v1334_v9 = vld [vmem:[#allocation6 + $0x30] sm:$0xff] (%p455_p1)   ;;  %v1876_v22 = vshrl.u32 (%p455_p1), %v625_v21, 7  ;;  %1192 = vmatprep.mubr.msk.bf16.mxu1 (%p455_p1), %vm1596_vm1, %v1595_v20  ;;  %s1121_s15 = sshll.u32 (%p455_p1), %s1702_s0, 7  ;;  %s2038_s22 = sld [smem:[#allocation30_spill]] (%p455_p1) }
  0xab   : > { %1162 = vmatprep.subr.bf16.mxu0 (%p455_p1), %v1329_v1  ;;  %v1335_v10 = vld [vmem:[#allocation6 + $0x38] sm:$0xff] (%p455_p1)   ;;  %v465_v11 = vld [vmem:[#allocation2 + $0x10] sm:$0xff] (%p455_p1)  ;;  %v467_v13 = vld [vmem:[#allocation2 + $0x20] sm:$0xff] (%p455_p1)  ;;  %s2040_s13 = sand.u32 (%p455_p1), 1, %s1570_s19   ;;  %s1598_s20 = smov (%p455_p1), [#allocation12]  }
  0xac   : > { %1176 = vmatprep.mubr.bf16.mxu0 (%p455_p1), %v471_v6  ;;  %v466_v12 = vld [vmem:[#allocation2 + $0x18] sm:$0xff] (%p455_p1)  ;;  %v468_v14 = vld [vmem:[#allocation2 + $0x28] sm:$0xff] (%p455_p1)  ;;  %v469_v17 = vld [vmem:[#allocation2 + $0x30] sm:$0xff] (%p455_p1)  ;;  %v627_v24 = vsub.s32 (%p455_p1), 0, %v1876_v22  ;;  %s956_s26 = scalar_lea.sflag (%p455_p1), [#allocation8], %s2040_s13  ;;  %s1500_s25 = sshll.u32 (%p455_p1), %s1598_s20, 4  ;;  %s1501_s25 = int_to_ptr.vmem [resolvable:$false] %s1500_s25 }
  0xad   : > { %v472_v15 = vpack.c.bf16 (%p455_p1), %v466_v12, %v465_v11  ;;  %v473_v16 = vpack.c.bf16 (%p455_p1), %v468_v14, %v467_v13  ;;  %v470_v18 = vld [vmem:[#allocation2 + $0x38] sm:$0xff] (%p455_p1)  ;;  %v619_v23 = vld [vmem:[%s2035_s18] sm:$0x1] (%p455_p1)  ;;  %v1336_v60 = vld [vmem:[#allocation9] sm:$0xff] (%p455_p1)   ;;  %s2037_s18 = scalar_lea.vmem (%p455_p1), [#allocation12], %s1842_s29  ;;  %s1502_s30 = scalar_lea.vmem (%p455_p1), %s1501_s25, 256 }
  0xae   : > { %1163 = vmatpush3.bf16.msra.mxu0 (%p455_p1), %v1329_v1  ;;  %v474_v19 = vpack.c.bf16 (%p455_p1), %v470_v18, %v469_v17  ;;  %vm620_vm0 = vcmp.ne.s32.totalorder (%p455_p1), %v619_v23, 0  ;;  %v623_v27 = vld [vmem:[%s1999_s11] sm:$0xff] (%p455_p1)  ;;  %v1337_v61 = vld [vmem:[#allocation9 + $0x8] sm:$0xff] (%p455_p1)   ;;  %v1339_v63 = vld [vmem:[#allocation9 + $0x18] sm:$0xff] (%p455_p1)   ;;  %s969_s21 = sshll.u32 (%p455_p1), %s2037_s18, 4  ;;  %s2039_s17 = smov (%p455_p1), %s2037_s18  ;;  %s1944_s21 = int_to_ptr.vmem [resolvable:$true] %s969_s21 }
  0xaf   : > { %1164 = vmatprep.subr.bf16.mxu0 (%p455_p1), %v1330_v2  ;;  %v1097_v25 = vsel (%p455_p1), %vm620_vm0, 1.0, %v1595_v20  ;;  %v1088_v30 = vld [vmem:[%s1992_s4] ss:$0 sm:$0xff] (%p455_p1)  ;;  %v1340_v0 = vld [vmem:[#allocation9 + $0x20] sm:$0xff] (%p455_p1)   ;;  %v1341_v1 = vld [vmem:[#allocation9 + $0x28] sm:$0xff] (%p455_p1)   ;;  %s1496_s0 = scalar_lea.vmem (%p455_p1), %s1944_s21, 128  ;;  %p1503_p2 = scmp.lt.s32.totalorder (%p455_p1), %s1944_s21, %s1501_s25 }
  0xb0   : > { %v628_v26 = vrot.slane %v1097_v25, %v627_v24  ;;  %v1338_v62 = vld [vmem:[#allocation9 + $0x10] sm:$0xff]   ;;  %v1344_v21 = vld [vmem:[#allocation11] sm:$0xff]   ;;  %v1345_v23 = vld [vmem:[#allocation11 + $0x8] sm:$0xff]   ;;  %s1942_s14 = scalar_lea.hbm %s2038_s22, %s1121_s15  ;;  %p1497_p7 = scmp.ne.s32.totalorder %s1944_s21, %s1496_s0 }
  0xb1   : > { %v1099_v13 = vld [vmem:[%s1994_s6] ss:$0 sm:$0xff]  ;;  %p2041_p10 = scmp.ne.s32.totalorder %s2036_s28, 0  ;;  %p1504_p4 = scmp.lt.s32.totalorder %s1502_s30, %s1496_s0 }
  0xb2   : > { %1165 = vmatpush3.bf16.msra.mxu0 %v1330_v2  ;;  %v630_v28 = vmul.f32 %v628_v26, %v623_v27  ;;  %v1342_v2 = vld [vmem:[#allocation9 + $0x30] sm:$0xff]  }
  0xb3   : > { %1166 = vmatprep.subr.bf16.mxu0 %v1331_v3  ;;  %p1498_p11 = pnand %p1497_p7, %p2041_p10  ;;  %p1505_p9 = por %p1504_p4, %p1503_p2 }
  0xb4   : > { %v632_v29 = vsel %vm631_vm2, %v630_v28, 0.0  ;;  %v635_v59 = vpack.c.bf16 %v630_v28, %v630_v28 }
  0xb5   : > { %633 = vadd.xlane.f32.xlu0 %v632_v29  ;;  %v1346_v29 = vld [vmem:[#allocation11 + $0x10] sm:$0xff]   ;;  %p1499_p0 = pneg %p1498_p11 }
  0xb6   : > { %1167 = vmatpush3.bf16.msra.mxu0 %v1331_v3  ;;  %v1343_v3 = vld [vmem:[#allocation9 + $0x38] sm:$0xff]  }
  0xb7   : > { %1168 = vmatprep.subr.bf16.mxu0 %v1332_v7  ;;  %p1506_p12 = pnand %p1505_p9, %p1499_p0 }
  0xba   : > { %1169 = vmatpush3.bf16.msra.mxu0 %v1332_v7 }
  0xbb   : > { %1170 = vmatprep.subr.bf16.mxu0 %v1333_v8 }
  0xbe   : > { %1171 = vmatpush3.bf16.msra.mxu0 %v1333_v8 }
  0xbf   : > { %1172 = vmatprep.subr.bf16.mxu0 %v1334_v9 }
  0xc2   : > { %1173 = vmatpush3.bf16.msra.mxu0 %v1334_v9 }
  0xc3   : > { %1174 = vmatprep.subr.bf16.mxu0 %v1335_v10 }
  0xc6   : > { %1175 = vmatpush3.bf16.msra.mxu0 %v1335_v10 }
  0xc7   : > { %1216 = vmatprep.subr.bf16.mxu0 %v1595_v20 }
  0xc9   : > { %1177 = vmatmul.mubr.bf16.vlgmr.msra.gmra.mrb[0].mxu0 %v472_v15 }
  0xca   : > { %1180 = vmatprep.mubr.bf16.mxu0 %v473_v16  ;;  %1217 = vmatpush3.bf16.msra.mxu0 %v1344_v21 }
  0xcb   : > { %1218 = vmatprep.subr.bf16.mxu0 %v1595_v20 }
  0xce   : > { %1219 = vmatpush3.bf16.msra.mxu0 %v1345_v23 }
  0xcf   : > { %1220 = vmatprep.subr.bf16.mxu0 %v1595_v20 }
  0xd1   : > { %1181 = vmatmul.mubr.bf16.gmra.mrb[4].mxu0 %v474_v19 }
  0xd2   : > { %1232 = vmatprep.mubr.msk.bf16.mxu0 %vm1596_vm1, %v1595_v20  ;;  %1221 = vmatpush3.bf16.msra.mxu0 %v1346_v29 }
  0xd3   : > { %1222 = vmatprep.subr.bf16.mxu0 %v1595_v20 }
 0x142   : > { %v634_v4 = vpop.xlane.xlu0 %633 }
 0x143   : > { %v683_v5 = vmax.f32 %v634_v4, 1.0 }
 0x19c   : > { %v1178_v31 = vpop.f32.mrb[0].mxu0 }
 0x19d   : > { %v589_v32 = vadd.f32 %v1178_v31, %v1088_v30  ;;  %v580_v33 = vpop.f32.mrb[1].mxu0  ;;  %v1348_v31 = vld [vmem:[#allocation11 + $0x20] sm:$0xff]  }
 0x19e   : > { %v581_v34 = vadd.f32 %v1088_v30, %v580_v33  ;;  %v1179_v35 = vpop.f32.mrb[2].mxu0  ;;  %v1350_v33 = vld [vmem:[#allocation11 + $0x30] sm:$0xff]  }
 0x19f   : > { %1352 = vtanh.f32 %v589_v32  ;;  %v592_v36 = vadd.f32 %v1179_v35, %v1088_v30  ;;  %v583_v37 = vpop.f32.mrb[3].mxu0  ;;  %v1349_v32 = vld [vmem:[#allocation11 + $0x28] sm:$0xff]  }
 0x1a0   : > { %1354 = vtanh.f32 %v581_v34  ;;  %v584_v38 = vadd.f32 %v1088_v30, %v583_v37  ;;  %v1351_v34 = vld [vmem:[#allocation11 + $0x38] sm:$0xff]  }
 0x1a1   : > { %1356 = vtanh.f32 %v592_v36 }
 0x1a2   : > { %1358 = vtanh.f32 %v584_v38 }
 0x1a4   : > { %v1182_v39 = vpop.f32.mrb[4].mxu0 }
 0x1a5   : > { %v605_v40 = vadd.f32 %v1182_v39, %v1088_v30  ;;  %v596_v41 = vpop.f32.mrb[5].mxu0  ;;  %v1108_v39 = vld [vmem:[%s1995_s7] ss:$0 sm:$0xff] }
 0x1a6   : > { %v597_v42 = vadd.f32 %v1088_v30, %v596_v41  ;;  %v1183_v43 = vpop.f32.mrb[6].mxu0  ;;  %v1109_v41 = vld [vmem:[%s1996_s8] ss:$0 sm:$0xff] }
 0x1a7   : > { %1360 = vtanh.f32 %v605_v40  ;;  %v608_v44 = vadd.f32 %v1183_v43, %v1088_v30  ;;  %v599_v45 = vpop.f32.mrb[7].mxu0 }
 0x1a8   : > { %1362 = vtanh.f32 %v597_v42  ;;  %v600_v46 = vadd.f32 %v1088_v30, %v599_v45  ;;  %v1347_v30 = vld [vmem:[#allocation11 + $0x18] sm:$0xff]  }
 0x1a9   : > { %v1353_v47 = vpop.eup %1352  ;;  %1364 = vtanh.f32 %v608_v44  ;;  %1223 = vmatpush3.bf16.msra.mxu0 %v1347_v30 }
 0x1aa   : > { %v1355_v48 = vpop.eup %1354  ;;  %1366 = vtanh.f32 %v600_v46  ;;  %1224 = vmatprep.subr.bf16.mxu0 %v1595_v20 }
 0x1ab   : > { %v1357_v49 = vpop.eup %1356  ;;  %1368 = vrcp.f32 %v683_v5 }
 0x1ac   : > { %v1359_v50 = vpop.eup %1358  ;;  %v637_v51 = vpack.c.bf16 %v1357_v49, %v1353_v47 }
 0x1ad   : > { %v636_v52 = vpack.c.bf16 %v1359_v50, %v1355_v48  ;;  %1225 = vmatpush3.bf16.msra.mxu0 %v1348_v31 }
 0x1ae   : > { %1226 = vmatprep.subr.bf16.mxu0 %v1595_v20 }
 0x1af   : > { %1185 = vmatpush3.bf16.msra.mxu1 %v636_v52 }
 0x1b0   : > { %1186 = vmatprep.subr.bf16.mxu1 %v1595_v20 }
 0x1b1   : > { %v1361_v53 = vpop.eup %1360  ;;  %1227 = vmatpush3.bf16.msra.mxu0 %v1349_v32 }
 0x1b2   : > { %v1363_v54 = vpop.eup %1362  ;;  %1228 = vmatprep.subr.bf16.mxu0 %v1595_v20 }
 0x1b3   : > { %v1365_v55 = vpop.eup %1364  ;;  %1187 = vmatpush3.bf16.msra.mxu1 %v637_v51  ;;  %v939_v51 = vld [vmem:[%s2000_s12] sm:$0x1] }
 0x1b4   : > { %v1367_v56 = vpop.eup %1366  ;;  %1188 = vmatprep.subr.bf16.mxu1 %v1595_v20  ;;  %v639_v57 = vpack.c.bf16 %v1365_v55, %v1361_v53  ;;  %vm940_vm3 = vcmp.gt.f32.partialorder %v939_v51, 0.5 }
 0x1b5   : > { %v638_v58 = vpack.c.bf16 %v1367_v56, %v1363_v54  ;;  %v1369_v6 = vpop.eup %1368  ;;  %1229 = vmatpush3.bf16.msra.mxu0 %v1350_v33  ;;  %v1597_v54 = vmov 0  }
 0x1b6   : > { %1230 = vmatprep.subr.bf16.mxu0 %v1595_v20  ;;  %v947_v55 = vsel %vm940_vm3, 1, %v1597_v54 }
 0x1b7   : > { %1189 = vmatpush3.bf16.msra.mxu1 %v638_v58  ;;  %v951_v56 = vrot.slane %v947_v55, %v627_v24 }
 0x1b8   : > { %1190 = vmatprep.subr.bf16.mxu1 %v1595_v20 }
 0x1b9   : > { %1231 = vmatpush3.bf16.msra.mxu0 %v1351_v34  ;;  %vm952_vm4 = vcmp.eq.s32.totalorder %v951_v56, 1 }
 0x1bb   : > { %1191 = vmatpush3.bf16.msra.mxu1 %v639_v57 }
 0x1bc   : > { %1196 = vmatprep.subr.bf16.mxu1 %v1595_v20 }
 0x1be   : > { %1193 = vmatmul.mubr.msk.bf16.vlgmr.msra.gmra.mrb[0].mxu1 %vm631_vm2, %v635_v59 }
 0x1bf   : > { %1197 = vmatpush3.bf16.msra.mxu1 %v1336_v60  ;;  %1212 = vmatprep.mubr.msk.bf16.mxu1 %vm1596_vm1, %v1595_v20 }
 0x1c0   : > { %1198 = vmatprep.subr.bf16.mxu1 %v1595_v20 }
 0x1c3   : > { %1199 = vmatpush3.bf16.msra.mxu1 %v1337_v61 }
 0x1c4   : > { %1200 = vmatprep.subr.bf16.mxu1 %v1595_v20 }
 0x1c7   : > { %1201 = vmatpush3.bf16.msra.mxu1 %v1338_v62 }
 0x1c8   : > { %1202 = vmatprep.subr.bf16.mxu1 %v1595_v20 }
 0x1cb   : > { %1203 = vmatpush3.bf16.msra.mxu1 %v1339_v63 }
 0x1cc   : > { %1204 = vmatprep.subr.bf16.mxu1 %v1595_v20 }
 0x1cf   : > { %1205 = vmatpush3.bf16.msra.mxu1 %v1340_v0 }
 0x1d0   : > { %1206 = vmatprep.subr.bf16.mxu1 %v1595_v20 }
 0x1d3   : > { %1207 = vmatpush3.bf16.msra.mxu1 %v1341_v1 }
 0x1d4   : > { %1208 = vmatprep.subr.bf16.mxu1 %v1595_v20 }
 0x1d7   : > { %1209 = vmatpush3.bf16.msra.mxu1 %v1342_v2 }
 0x1d8   : > { %1210 = vmatprep.subr.bf16.mxu1 %v1595_v20  ;;  %v1110_v20 = vld [vmem:[%s1998_s10] ss:$0 sm:$0xff] }
 0x1db   : > { %1211 = vmatpush3.bf16.msra.mxu1 %v1343_v3 }
 0x291   : > { %v677_v7 = vpop.f32.mrb[0].mxu1 }
 0x292   : > { %v685_v8 = vmul.f32 %v1369_v6, %v677_v7  ;;  %v1194_v9 = vpop.f32.mrb[1].mxu1 }
 0x293   : > { %v680_v10 = vpop.f32.mrb[2].mxu1 }
 0x294   : > { %v686_v11 = vpack.c.bf16 %v685_v8, %v685_v8  ;;  %v1195_v12 = vpop.f32.mrb[3].mxu1 }
 0x296   : > { %1213 = vmatmul.mubr.bf16.vlgmr.msra.gmra.mrb[4].mxu1 %v686_v11 }
 0x369   : > { %v792_v14 = vpop.f32.mrb[4].mxu1 }
 0x36a   : > { %v793_v15 = vadd.f32 %v1099_v13, %v792_v14  ;;  %v1214_v16 = vpop.f32.mrb[5].mxu1 }
 0x36b   : > { %v795_v17 = vpop.f32.mrb[6].mxu1 }
 0x36c   : > { %1370 = vtanh.f32 %v793_v15  ;;  %v1215_v18 = vpop.f32.mrb[7].mxu1 }
 0x376   : > { %v1371_v19 = vpop.eup %1370 }
 0x377   : > { %799 = vadd.xlane.f32.xlu0 %v1371_v19 }
 0x404   : > { %v800_v25 = vpop.xlane.xlu0 %799 }
 0x405   : > { %v802_v26 = vmul.f32 0.0078125, %v800_v25 }
 0x407   : > { %v803_v27 = vsub.f32 %v1371_v19, %v802_v26 }
 0x409   : > { %v804_v28 = vmul.f32 %v803_v27, %v803_v27 }
 0x40b   : > { %805 = vadd.xlane.f32.xlu1 %v804_v28 }
 0x498   : > { %v806_v35 = vpop.xlane.xlu1 %805 }
 0x499   : > { %v807_v36 = vmul.f32 0.0078125, %v806_v35 }
 0x49b   : > { %v808_v37 = vadd.f32 1e-05, %v807_v36 }
 0x49d   : > { %1372 = vrsqrt.f32 %v808_v37 }
 0x4a7   : > { %v1373_v38 = vpop.eup %1372 }
 0x4a8   : > { %v810_v40 = vmul.f32 %v1373_v38, %v803_v27 }
 0x4aa   : > { %v818_v42 = vmul.f32 %v1108_v39, %v810_v40 }
 0x4ac   : > { %v826_v43 = vadd.f32 %v1109_v41, %v818_v42 }
 0x4ae   : > { %v827_v44 = vpack.c.bf16 %v826_v43, %v826_v43 }
 0x4b0   : > { %1233 = vmatmul.mubr.bf16.vlgmr.msra.gmra.mrb[8].mxu0 %v827_v44 }
 0x583   : > { %v933_v45 = vpop.f32.mrb[8].mxu0 }
 0x584   : > { %v934_v46 = vadd.f32 %v1110_v20, %v933_v45  ;;  %v1234_v47 = vpop.f32.mrb[9].mxu0 }
 0x585   : > { %v936_v48 = vpop.f32.mrb[10].mxu0 }
 0x586   : > { %v1119_v49 = vmul.f32 -1.442695, %v934_v46  ;;  %v1235_v50 = vpop.f32.mrb[11].mxu0 }
 0x588   : > { %1374 = vpow2.f32 %v1119_v49 }
 0x592   : > { %v1375_v52 = vpop.eup %1374 }
 0x593   : > { %v944_v53 = vadd.f32 1.0, %v1375_v52 }
 0x595   : > { %1376 = vrcp.f32 %v944_v53 }
 0x59f   : > { %v1377_v57 = vpop.eup %1376 }
 0x5a0   : > { %v953_v58 = vsel %vm952_vm4, %v1377_v57, %v934_v46 }
 0x5a1   : > { %954 = vst [vmem:[%s2039_s17] sm:$0xff] %v953_v58 }
 0x5a2   : > { %1509 = shalt.err (!%p1506_p12)
}
 0x5a3   : > { %s1510_s29 = scalar_lea.hbm %s1942_s14, 128  ;;  %s1514_s3 = scalar_lea.hbm %s2038_s22, 256 }
 0x5a4   : > { %p1511_p5 = scmp.ne.s32.totalorder %s1942_s14, %s1510_s29  ;;  %p1515_p8 = scmp.lt.u32.totalorder %s1942_s14, %s2038_s22 }
 0x5a5   : > { %p1516_p13 = scmp.lt.u32.totalorder %s1514_s3, %s1510_s29  ;;  %p1518_p7 = scmp.lt.u32.totalorder %s1510_s29, %s1942_s14 }
 0x5a6   : > { %p1512_p3 = pnand %p1511_p5, %p2041_p10 }
 0x5a7   : > { %p1517_p1 = por %p1516_p13, %p1515_p8 }
 0x5a8   : > { %p1513_p6 = pneg %p1512_p3 }
 0x5a9   : > { %p1519_p11 = por %p1518_p7, %p1517_p1 }
 0x5ab   : > { %p1520_p0 = pnand %p1519_p11, %p1513_p6 }
 0x5ad   : > { %1523 = shalt.err (!%p1520_p0)
}
 0x5ae   : > { %1248 = dma.vmem_to_hbm [thread:$0]  (%p2041_p10), %s1944_s21, 128, %s1942_s14, %s956_s26  }
 0x5af PF: > { %s2042_s27 = sld [smem:[#allocation24_spill]]  ;;  %s2043_s24 = sld [smem:[#allocation22_spill]] }
 0x5b0   : > { %s2044_s17 = sld [smem:[#allocation28_spill]] }
 0x5b5   : > { %p1270_p2 = scmp.ge.s32.totalorder %s2042_s27, 2  ;;  %s981_s13 = sand.u32 1, %s2043_s24  }
 0x5b6   : > { %p2045_p4 = scmp.ne.s32.totalorder %s2044_s17, 0  ;;  %s982_s0 = scalar_lea.sflag [#allocation8], %s981_s13 }
 0x5b8   : > { %p1261_p9 = pnand %p1270_p2, %p2045_p4 }
 0x5ba   : > { %1561 = dma.done.wait (!%p1261_p9), %s982_s0, 128  }
 0x5bb   : > { %1563 = vsyncadd (!%p1261_p9), %s982_s0, 4294967168  ;;  %s2046_s21 = sld [smem:[#allocation25_spill]]  ;;  %s2047_s20 = sld [smem:[#allocation23_spill]] }
 0x5bc   : > { %s2048_s25 = sld [smem:[#allocation26_spill]]  ;;  %s2049_s18 = smov %s1570_s19 }
 0x5c1   : > { %p29_p12 = scmp.ge.s32.totalorder %s2046_s21, 4   ;;  %s2050_s19 = smov %s2047_s20 }
 0x5c2   : > { %s2051_s20 = smov %s2048_s25 }
 0x5c3   :  { %31 = sbr.rel (!%p29_p12) target bundleno = 18 (0x12), region = 154 }
 0x5ca   :  { %987 = vsyncpa [#allocation7], 1 }
 0x5cb   :  { %989 = vsyncpa [#allocation7 + $0x1], 1 }
 0x5cc   :  { %990 = vsyncpa [#allocation10], 1 }
 0x5cd   :  { %991 = vsyncpa [#allocation8], 1 }
 0x5ce   :  { %993 = vsyncpa [#allocation8 + $0x1], 1 }
 0x5cf   :  { %994 = vsyncmov [#allocation3] }
 0x5d2   :  { %s995_s28 = vpop.sfrf %994 }
 0x5d3   :  { %p1124_p10 = scmp.ne.s32.totalorder %s995_s28, 0 }
 0x5d5   :  { %999 = shalt.err (%p1124_p10)  }

</bundles_post_ra>
